<compile_context>
chip_gen: v6e
topology: v6e:2x2x1
jax: 0.10.0
libtpu: 0.0.40
codegen_flags: <defaults>
</compile_context>

<pallas_src>
import functools
import math

import jax
import jax.numpy as jnp
from jax import lax
from jax.experimental import pallas as pl
from jax.experimental.pallas import tpu as pltpu


# -----------------------------------------------------------------------------
# Positional-encoding tables (PositionalEncoding.__init__ semantics).
# NB: the module uses positions 1..S (torch.arange(1, max_len + 1)) - kept here.
# -----------------------------------------------------------------------------
def _pos_tables(S, F):
    t = jnp.arange(1, S + 1, dtype=jnp.float32).reshape(-1, 1)            # positions 1..S
    denom = jnp.power(10000.0, jnp.arange(0, F, 2, dtype=jnp.float32) / F)
    X = t / denom                                                          # (S, F//2)
    sinx, cosx = jnp.sin(X), jnp.cos(X)
    P = jnp.zeros((S, F), jnp.float32)
    P = P.at[:, 0::2].set(sinx).at[:, 1::2].set(cosx)                      # P[:S] of the module
    # Interleaved tables so to_relatvive() becomes:
    #   res = out*cos_full + roll(out, j+1)*sin_a + roll(out, j-1)*sin_b
    cos_full = jnp.repeat(cosx, 2, axis=-1)                                # (S, F)
    sin_a = jnp.zeros((S, F), jnp.float32).at[:, 0::2].set(-sinx)          # even lanes only
    sin_b = jnp.zeros((S, F), jnp.float32).at[:, 1::2].set(sinx)           # odd lanes only
    return P, cos_full, sin_a, sin_b, sinx, cosx


# -----------------------------------------------------------------------------
# Pallas kernel: one (M = TN*S, F) slab of fused sequences per grid step.
#   qk   = x @ [Wq|Wk] + [bq|bk]                              (bf16 MXU, f32 acc)
#   s_h  = q_h @ k_h^T * scale + blockdiag_mask               ((M, M) MXU matmul)
#   p_h  = softmax(s_h)                                       (f32, full-lane vregs)
#   out  = sum_h p_h @ tile_TN(v_h @ Wo_h) + bo               ((M, M)@(M, F) MXU)
#   res  = to_relatvive(out)  via lane rolls + pre-zeroed sin/cos tables
# -----------------------------------------------------------------------------
def _mha_posrel_kernel(x_ref, wqk_ref, bqk_ref, vwo_ref, bo_ref, mask_ref,
                       cos_ref, sina_ref, sinb_ref, o_ref, *, heads):
    f32 = jnp.float32
    bf16 = jnp.bfloat16
    M, F = x_ref.shape
    hd = F // heads
    scale = 1.0 / math.sqrt(hd)

    # ---- fused Q|K projection: (M, F) @ (F, 2F) on the MXU (x already bf16)
    qk = jnp.dot(x_ref[...], wqk_ref[...], preferred_element_type=f32) + bqk_ref[...]
    qk = qk.astype(bf16)

    mask = mask_ref[...]                                  # (M, M) block-diagonal additive mask
    out = jnp.zeros((M, F), f32)
    for h in range(heads):                                # static unrolled; heads is small
        q_h = qk[:, h * hd:(h + 1) * hd]                  # (M, hd)
        k_h = qk[:, F + h * hd:F + (h + 1) * hd]          # (M, hd)
        # Full (M, M) scores (q_h @ k_h^T); cross-sequence entries masked before softmax.
        s = lax.dot_general(q_h, k_h, (((1,), (1,)), ((), ())),
                            preferred_element_type=f32) * scale + mask
        s = s - jnp.max(s, axis=-1, keepdims=True)
        e = jnp.exp(s)
        p = e / jnp.sum(e, axis=-1, keepdims=True)        # (M, M), f32
        # PV + per-head output projection folded into one deep matmul:
        #   p is block-diagonal, so p @ tile_TN(v_h @ Wo_h) == per-sequence attn @ v_h @ Wo_h.
        out = out + jnp.dot(p.astype(bf16), vwo_ref[h * M:(h + 1) * M, :],
                            preferred_element_type=f32)
    out = out + bo_ref[...]

    # ---- to_relatvive(): pairwise (even, odd) channel rotation.
    #      partner[:, j] = out[:, j ^ 1] via lane rolls; parity already baked into the
    #      pre-zeroed sin tables (no iota / select in the hot path).
    res = (out * cos_ref[...]
           + pltpu.roll(out, F - 1, axis=1) * sina_ref[...]     # out[:, j + 1] at even j
           + pltpu.roll(out, 1, axis=1) * sinb_ref[...])        # out[:, j - 1] at odd j
    o_ref[...] = res.astype(o_ref.dtype)


def _pick_tn(n_seq, seq_len):
    """Sequences fused per grid step.

    Generation aware: ~256 matmul rows/step on v6e/v7x (2x256x256 MXU), 128 on v5e
    (4x128x128); keep >=2 grid steps (>=4 on v7x so each TensorCore still pipelines);
    must divide n_seq exactly.
    """
    try:
        kind = jax.devices()[0].device_kind.lower()
    except Exception:  # pragma: no cover - defensive; default to the newer-chip target
        kind = ""
    target_rows = 128 if "v5" in kind else 256
    min_steps = 4 if "v7" in kind else 2
    tn = max(1, min(n_seq, max(1, target_rows // max(seq_len, 1))))
    if n_seq >= min_steps:
        tn = max(1, min(tn, n_seq // min_steps))
    while n_seq % tn:
        tn -= 1
    return tn


def mha_posrel(seq_x, params):
    """MultiheadAttention(x, x, pos_enc(zeros)) + to_relatvive over (N, S, F) sequences."""
    N, S, F = seq_x.shape
    heads = params["heads"]
    hd = F // heads
    P, cos_full, sin_a, sin_b, _, _ = _pos_tables(S, F)

    # ---- hoisted, sequence-independent constants --------------------------------
    wqk = jnp.concatenate([params["wq"], params["wk"]], axis=1).astype(jnp.bfloat16)
    bqk = jnp.concatenate([params["bq"], params["bk"]], axis=1)             # (1, 2F)
    # v = P @ Wv + bv is sequence independent -> fold into the output projection:
    #   concat_h(p_h @ v_h) @ Wo == sum_h p_h @ (v_h @ Wo_h)
    v_const = P @ params["wv"] + params["bv"]                               # (S, F)
    wo = params["wo"]
    vwo = [v_const[:, h * hd:(h + 1) * hd] @ wo[h * hd:(h + 1) * hd, :]
           for h in range(heads)]                                           # heads x (S, F)
    bo = params["bo"]

    TN = _pick_tn(N, S)
    M = TN * S        # rows per grid step (S is a multiple of 8 for RAFT-style inputs)

    # Per-sequence tables tiled to the fused (M, F) block rows (sequence independent).
    vwo_tiled = jnp.concatenate([jnp.tile(v, (TN, 1)) for v in vwo],
                                axis=0).astype(jnp.bfloat16)                # (heads*M, F)
    cos_t = jnp.tile(cos_full, (TN, 1))                                     # (M, F)
    sina_t = jnp.tile(sin_a, (TN, 1))
    sinb_t = jnp.tile(sin_b, (TN, 1))

    # Block-diagonal additive mask: -1e9 on cross-sequence score entries.
    seq_id = jnp.arange(M, dtype=jnp.int32) // S
    mask = jnp.where(seq_id[:, None] == seq_id[None, :], 0.0, -1e9).astype(jnp.float32)

    # bf16 at the pallas_call boundary: halves the dominant x DMA, no in-kernel cast.
    x2 = seq_x.reshape(N * S, F).astype(jnp.bfloat16)

    const = lambda i: (0, 0)
    out2 = pl.pallas_call(
        functools.partial(_mha_posrel_kernel, heads=heads),
        out_shape=jax.ShapeDtypeStruct((N * S, F), jnp.float32),
        grid=(N // TN,),
        in_specs=[
            pl.BlockSpec((M, F), lambda i: (i, 0)),      # x rows (TN fused sequences, bf16)
            pl.BlockSpec((F, 2 * F), const),             # [Wq | Wk]             (bf16)
            pl.BlockSpec((1, 2 * F), const),             # [bq | bk]
            pl.BlockSpec((heads * M, F), const),         # tiled stack_h(v_h@Wo_h) (bf16)
            pl.BlockSpec((1, F), const),                 # bo
            pl.BlockSpec((M, M), const),                 # block-diagonal mask
            pl.BlockSpec((M, F), const),                 # cos table
            pl.BlockSpec((M, F), const),                 # -sin table (even lanes)
            pl.BlockSpec((M, F), const),                 # +sin table (odd lanes)
        ],
        out_specs=pl.BlockSpec((M, F), lambda i: (i, 0)),
        compiler_params=pltpu.CompilerParams(dimension_semantics=("parallel",)),
    )(x2, wqk, bqk, vwo_tiled, bo, mask, cos_t, sina_t, sinb_t)
    return out2.reshape(N, S, F)


# -----------------------------------------------------------------------------
# CoordinateAttention.forward glue.  Two pallas_calls (rows, cols): no host-side
# row/col concat; the column transpose is the only extra XLA data movement.
# -----------------------------------------------------------------------------
def coordinate_attention(x, params):
    B, H, W, F = x.shape
    enc = params["enc_size"]
    row_x = x.reshape(B * H, W, F)                                  # free reshape
    col_x = jnp.transpose(x, (0, 2, 1, 3)).reshape(B * W, H, F)     # columns as sequences
    row_res = mha_posrel(row_x, params).reshape(B, H, W, F)[..., :enc]
    col_res = mha_posrel(col_x, params).reshape(B, W, H, F)[..., :enc]
    # NB: faithful to the module: col_res is only *reshaped* (not permuted back);
    # like the module's torch.cat this requires H == W.
    return jnp.concatenate([x, row_res, col_res], axis=-1)


# -----------------------------------------------------------------------------
# Pure-JAX f32 reference (correctness guard for the kernel).
# -----------------------------------------------------------------------------
def _ref_mha_posrel(seq_x, params):
    N, S, F = seq_x.shape
    heads = params["heads"]
    hd = F // heads
    P, _, _, _, sinx, cosx = _pos_tables(S, F)
    q = seq_x @ params["wq"] + params["bq"]
    k = seq_x @ params["wk"] + params["bk"]
    v = jnp.broadcast_to(P[None], (N, S, F)) @ params["wv"] + params["bv"]
    split = lambda a: a.reshape(N, S, heads, hd).transpose(0, 2, 1, 3)
    q, k, v = split(q), split(k), split(v)
    s = jnp.einsum("nhqd,nhkd->nhqk", q, k) / jnp.sqrt(jnp.float32(hd))
    p = jax.nn.softmax(s, axis=-1)
    o = jnp.einsum("nhqk,nhkd->nhqd", p, v).transpose(0, 2, 1, 3).reshape(N, S, F)
    o = o @ params["wo"] + params["bo"]
    all_sin, all_cos = o[:, :, 0::2], o[:, :, 1::2]
    res = jnp.zeros_like(o)
    res = res.at[:, :, 0::2].set(all_sin * cosx - all_cos * sinx)
    res = res.at[:, :, 1::2].set(all_cos * cosx + all_sin * sinx)
    return res


def ref_coordinate_attention(x, params):
    B, H, W, F = x.shape
    enc = params["enc_size"]
    row_x = x.reshape(B * H, W, F)
    col_x = jnp.transpose(x, (0, 2, 1, 3)).reshape(B * W, H, F)
    row_res = _ref_mha_posrel(row_x, params).reshape(B, H, W, F)[..., :enc]
    col_res = _ref_mha_posrel(col_x, params).reshape(B, W, H, F)[..., :enc]
    return jnp.concatenate([x, row_res, col_res], axis=-1)


if __name__ == "__main__":
    key = jax.random.PRNGKey(0)
    B, HW, F, heads = 2, 8, 128, 4     # x: (B, H, W, feature_size), H == W
    enc_size = F                       # module default: enc_size == feature_size

    ks = jax.random.split(key, 10)
    wscale, bscale = 0.05, 0.01
    # Deterministic synthetic MHA parameters, stored so the math is x @ W + b
    # (i.e. W already transposed relative to nn.MultiheadAttention storage).
    params = dict(
        heads=heads,
        enc_size=enc_size,
        wq=jax.random.normal(ks[0], (F, F), jnp.float32) * wscale,
        wk=jax.random.normal(ks[1], (F, F), jnp.float32) * wscale,
        wv=jax.random.normal(ks[2], (F, F), jnp.float32) * wscale,
        wo=jax.random.normal(ks[3], (F, F), jnp.float32) * wscale,
        bq=jax.random.normal(ks[4], (1, F), jnp.float32) * bscale,
        bk=jax.random.normal(ks[5], (1, F), jnp.float32) * bscale,
        bv=jax.random.normal(ks[6], (1, F), jnp.float32) * bscale,
        bo=jax.random.normal(ks[7], (1, F), jnp.float32) * bscale,
    )
    # nn.Dropout with p=0.0 is an identity and is omitted.
    x = jax.random.uniform(ks[8], (B, HW, HW, F), jnp.float32)

    out = jax.block_until_ready(coordinate_attention(x, params))
    ref = jax.block_until_ready(ref_coordinate_attention(x, params))

    assert out.shape == (B, HW, HW, F + 2 * enc_size), out.shape
    err = float(jnp.max(jnp.abs(out - ref)))
    # bf16 matmul inputs (f32 accumulate) vs the f32 reference -> relaxed tolerance.
    assert err < 1e-2, err
    print("KERNEL_OK")
</pallas_src>

<mosaic_0001>
module attributes {stable_mosaic.version = 11 : i64} {
  func.func @_mha_posrel_kernel(%arg0: i32, %arg1: memref<64x128xbf16, #tpu.memory_space<vmem>>, %arg2: memref<128x256xbf16, #tpu.memory_space<vmem>>, %arg3: memref<1x256xf32, #tpu.memory_space<vmem>>, %arg4: memref<256x128xbf16, #tpu.memory_space<vmem>>, %arg5: memref<1x128xf32, #tpu.memory_space<vmem>>, %arg6: memref<64x64xf32, #tpu.memory_space<vmem>>, %arg7: memref<64x128xf32, #tpu.memory_space<vmem>>, %arg8: memref<64x128xf32, #tpu.memory_space<vmem>>, %arg9: memref<64x128xf32, #tpu.memory_space<vmem>>, %arg10: memref<64x128xf32, #tpu.memory_space<vmem>>) attributes {dimension_semantics = [#tpu.dimension_semantics<parallel>], iteration_bounds = array<i64: 2>, scalar_prefetch = 0 : i64, scratch_operands = 0 : i64, tpu.core_type = #tpu.core_type<tc>, window_params = [{transform_indices = @transform_0, window_bounds = array<i64: 64, 128>}, {pipeline_mode = #tpu.pipeline_mode<synchronous>, transform_indices = @transform_1, window_bounds = array<i64: 128, 256>}, {pipeline_mode = #tpu.pipeline_mode<synchronous>, transform_indices = @transform_2, window_bounds = array<i64: 1, 256>}, {pipeline_mode = #tpu.pipeline_mode<synchronous>, transform_indices = @transform_3, window_bounds = array<i64: 256, 128>}, {pipeline_mode = #tpu.pipeline_mode<synchronous>, transform_indices = @transform_4, window_bounds = array<i64: 1, 128>}, {pipeline_mode = #tpu.pipeline_mode<synchronous>, transform_indices = @transform_5, window_bounds = array<i64: 64, 64>}, {pipeline_mode = #tpu.pipeline_mode<synchronous>, transform_indices = @transform_6, window_bounds = array<i64: 64, 128>}, {pipeline_mode = #tpu.pipeline_mode<synchronous>, transform_indices = @transform_7, window_bounds = array<i64: 64, 128>}, {pipeline_mode = #tpu.pipeline_mode<synchronous>, transform_indices = @transform_8, window_bounds = array<i64: 64, 128>}, {transform_indices = @transform_9, window_bounds = array<i64: 64, 128>}]} {
    %c0 = arith.constant 0 : index
    %c0_0 = arith.constant 0 : index
    %0 = vector.load %arg1[%c0, %c0_0] : memref<64x128xbf16, #tpu.memory_space<vmem>>, vector<64x128xbf16>
    %c0_1 = arith.constant 0 : index
    %c0_2 = arith.constant 0 : index
    %1 = vector.load %arg2[%c0_1, %c0_2] : memref<128x256xbf16, #tpu.memory_space<vmem>>, vector<128x256xbf16>
    %cst = arith.constant dense<0.000000e+00> : vector<64x256xf32>
    %2 = tpu.matmul %0, %1, %cst {dimension_numbers = #tpu.dot_dimension_numbers<[1], [0], [0], [1], [0, 0, 1, 1], [], []>} : vector<64x128xbf16>, vector<128x256xbf16>, vector<64x256xf32> -> vector<64x256xf32>
    %c0_3 = arith.constant 0 : index
    %c0_4 = arith.constant 0 : index
    %3 = vector.load %arg3[%c0_3, %c0_4] : memref<1x256xf32, #tpu.memory_space<vmem>>, vector<1x256xf32>
    %4 = vector.broadcast %3 : vector<1x256xf32> to vector<64x256xf32>
    %5 = arith.addf %2, %4 : vector<64x256xf32>
    %6 = arith.truncf %5 : vector<64x256xf32> to vector<64x256xbf16>
    %c0_5 = arith.constant 0 : index
    %c0_6 = arith.constant 0 : index
    %7 = vector.load %arg6[%c0_5, %c0_6] : memref<64x64xf32, #tpu.memory_space<vmem>>, vector<64x64xf32>
    %cst_7 = arith.constant 0.000000e+00 : f32
    %8 = vector.broadcast %cst_7 : f32 to vector<64x128xf32>
    %9 = vector.extract_strided_slice %6 {offsets = [0, 0], sizes = [64, 32], strides = [1, 1]} : vector<64x256xbf16> to vector<64x32xbf16>
    %10 = vector.extract_strided_slice %6 {offsets = [0, 128], sizes = [64, 32], strides = [1, 1]} : vector<64x256xbf16> to vector<64x32xbf16>
    %cst_8 = arith.constant dense<0.000000e+00> : vector<64x64xf32>
    %11 = tpu.matmul %9, %10, %cst_8 {dimension_numbers = #tpu.dot_dimension_numbers<[1], [1], [0], [0], [0, 0, 1, 0], [], []>} : vector<64x32xbf16>, vector<64x32xbf16>, vector<64x64xf32> -> vector<64x64xf32>
    %cst_9 = arith.constant 0.176776692 : f32
    %12 = vector.broadcast %cst_9 : f32 to vector<64x64xf32>
    %13 = arith.mulf %11, %12 : vector<64x64xf32>
    %14 = arith.addf %13, %7 : vector<64x64xf32>
    %cst_10 = arith.constant dense<0xFF800000> : vector<64xf32>
    %15 = vector.multi_reduction <maximumf>, %14, %cst_10 [1] : vector<64x64xf32> to vector<64xf32>
    %16 = vector.shape_cast %15 : vector<64xf32> to vector<64x1xf32>
    %17 = vector.broadcast %16 : vector<64x1xf32> to vector<64x64xf32>
    %18 = arith.subf %14, %17 : vector<64x64xf32>
    %19 = math.exp %18 : vector<64x64xf32>
    %cst_11 = arith.constant dense<0.000000e+00> : vector<64xf32>
    %20 = vector.multi_reduction <add>, %19, %cst_11 [1] : vector<64x64xf32> to vector<64xf32>
    %21 = vector.shape_cast %20 : vector<64xf32> to vector<64x1xf32>
    %22 = vector.broadcast %21 : vector<64x1xf32> to vector<64x64xf32>
    %23 = arith.divf %19, %22 : vector<64x64xf32>
    %24 = arith.truncf %23 : vector<64x64xf32> to vector<64x64xbf16>
    %c0_12 = arith.constant 0 : index
    %c0_13 = arith.constant 0 : index
    %25 = vector.load %arg4[%c0_12, %c0_13] : memref<256x128xbf16, #tpu.memory_space<vmem>>, vector<64x128xbf16>
    %cst_14 = arith.constant dense<0.000000e+00> : vector<64x128xf32>
    %26 = tpu.matmul %24, %25, %cst_14 {dimension_numbers = #tpu.dot_dimension_numbers<[1], [0], [0], [1], [0, 0, 1, 1], [], []>} : vector<64x64xbf16>, vector<64x128xbf16>, vector<64x128xf32> -> vector<64x128xf32>
    %27 = arith.addf %8, %26 : vector<64x128xf32>
    %28 = vector.extract_strided_slice %6 {offsets = [0, 32], sizes = [64, 32], strides = [1, 1]} : vector<64x256xbf16> to vector<64x32xbf16>
    %29 = vector.extract_strided_slice %6 {offsets = [0, 160], sizes = [64, 32], strides = [1, 1]} : vector<64x256xbf16> to vector<64x32xbf16>
    %cst_15 = arith.constant dense<0.000000e+00> : vector<64x64xf32>
    %30 = tpu.matmul %28, %29, %cst_15 {dimension_numbers = #tpu.dot_dimension_numbers<[1], [1], [0], [0], [0, 0, 1, 0], [], []>} : vector<64x32xbf16>, vector<64x32xbf16>, vector<64x64xf32> -> vector<64x64xf32>
    %cst_16 = arith.constant 0.176776692 : f32
    %31 = vector.broadcast %cst_16 : f32 to vector<64x64xf32>
    %32 = arith.mulf %30, %31 : vector<64x64xf32>
    %33 = arith.addf %32, %7 : vector<64x64xf32>
    %cst_17 = arith.constant dense<0xFF800000> : vector<64xf32>
    %34 = vector.multi_reduction <maximumf>, %33, %cst_17 [1] : vector<64x64xf32> to vector<64xf32>
    %35 = vector.shape_cast %34 : vector<64xf32> to vector<64x1xf32>
    %36 = vector.broadcast %35 : vector<64x1xf32> to vector<64x64xf32>
    %37 = arith.subf %33, %36 : vector<64x64xf32>
    %38 = math.exp %37 : vector<64x64xf32>
    %cst_18 = arith.constant dense<0.000000e+00> : vector<64xf32>
    %39 = vector.multi_reduction <add>, %38, %cst_18 [1] : vector<64x64xf32> to vector<64xf32>
    %40 = vector.shape_cast %39 : vector<64xf32> to vector<64x1xf32>
    %41 = vector.broadcast %40 : vector<64x1xf32> to vector<64x64xf32>
    %42 = arith.divf %38, %41 : vector<64x64xf32>
    %43 = arith.truncf %42 : vector<64x64xf32> to vector<64x64xbf16>
    %c64 = arith.constant 64 : index
    %c0_19 = arith.constant 0 : index
    %44 = vector.load %arg4[%c64, %c0_19] : memref<256x128xbf16, #tpu.memory_space<vmem>>, vector<64x128xbf16>
    %cst_20 = arith.constant dense<0.000000e+00> : vector<64x128xf32>
    %45 = tpu.matmul %43, %44, %cst_20 {dimension_numbers = #tpu.dot_dimension_numbers<[1], [0], [0], [1], [0, 0, 1, 1], [], []>} : vector<64x64xbf16>, vector<64x128xbf16>, vector<64x128xf32> -> vector<64x128xf32>
    %46 = arith.addf %27, %45 : vector<64x128xf32>
    %47 = vector.extract_strided_slice %6 {offsets = [0, 64], sizes = [64, 32], strides = [1, 1]} : vector<64x256xbf16> to vector<64x32xbf16>
    %48 = vector.extract_strided_slice %6 {offsets = [0, 192], sizes = [64, 32], strides = [1, 1]} : vector<64x256xbf16> to vector<64x32xbf16>
    %cst_21 = arith.constant dense<0.000000e+00> : vector<64x64xf32>
    %49 = tpu.matmul %47, %48, %cst_21 {dimension_numbers = #tpu.dot_dimension_numbers<[1], [1], [0], [0], [0, 0, 1, 0], [], []>} : vector<64x32xbf16>, vector<64x32xbf16>, vector<64x64xf32> -> vector<64x64xf32>
    %cst_22 = arith.constant 0.176776692 : f32
    %50 = vector.broadcast %cst_22 : f32 to vector<64x64xf32>
    %51 = arith.mulf %49, %50 : vector<64x64xf32>
    %52 = arith.addf %51, %7 : vector<64x64xf32>
    %cst_23 = arith.constant dense<0xFF800000> : vector<64xf32>
    %53 = vector.multi_reduction <maximumf>, %52, %cst_23 [1] : vector<64x64xf32> to vector<64xf32>
    %54 = vector.shape_cast %53 : vector<64xf32> to vector<64x1xf32>
    %55 = vector.broadcast %54 : vector<64x1xf32> to vector<64x64xf32>
    %56 = arith.subf %52, %55 : vector<64x64xf32>
    %57 = math.exp %56 : vector<64x64xf32>
    %cst_24 = arith.constant dense<0.000000e+00> : vector<64xf32>
    %58 = vector.multi_reduction <add>, %57, %cst_24 [1] : vector<64x64xf32> to vector<64xf32>
    %59 = vector.shape_cast %58 : vector<64xf32> to vector<64x1xf32>
    %60 = vector.broadcast %59 : vector<64x1xf32> to vector<64x64xf32>
    %61 = arith.divf %57, %60 : vector<64x64xf32>
    %62 = arith.truncf %61 : vector<64x64xf32> to vector<64x64xbf16>
    %c128 = arith.constant 128 : index
    %c0_25 = arith.constant 0 : index
    %63 = vector.load %arg4[%c128, %c0_25] : memref<256x128xbf16, #tpu.memory_space<vmem>>, vector<64x128xbf16>
    %cst_26 = arith.constant dense<0.000000e+00> : vector<64x128xf32>
    %64 = tpu.matmul %62, %63, %cst_26 {dimension_numbers = #tpu.dot_dimension_numbers<[1], [0], [0], [1], [0, 0, 1, 1], [], []>} : vector<64x64xbf16>, vector<64x128xbf16>, vector<64x128xf32> -> vector<64x128xf32>
    %65 = arith.addf %46, %64 : vector<64x128xf32>
    %66 = vector.extract_strided_slice %6 {offsets = [0, 96], sizes = [64, 32], strides = [1, 1]} : vector<64x256xbf16> to vector<64x32xbf16>
    %67 = vector.extract_strided_slice %6 {offsets = [0, 224], sizes = [64, 32], strides = [1, 1]} : vector<64x256xbf16> to vector<64x32xbf16>
    %cst_27 = arith.constant dense<0.000000e+00> : vector<64x64xf32>
    %68 = tpu.matmul %66, %67, %cst_27 {dimension_numbers = #tpu.dot_dimension_numbers<[1], [1], [0], [0], [0, 0, 1, 0], [], []>} : vector<64x32xbf16>, vector<64x32xbf16>, vector<64x64xf32> -> vector<64x64xf32>
    %cst_28 = arith.constant 0.176776692 : f32
    %69 = vector.broadcast %cst_28 : f32 to vector<64x64xf32>
    %70 = arith.mulf %68, %69 : vector<64x64xf32>
    %71 = arith.addf %70, %7 : vector<64x64xf32>
    %cst_29 = arith.constant dense<0xFF800000> : vector<64xf32>
    %72 = vector.multi_reduction <maximumf>, %71, %cst_29 [1] : vector<64x64xf32> to vector<64xf32>
    %73 = vector.shape_cast %72 : vector<64xf32> to vector<64x1xf32>
    %74 = vector.broadcast %73 : vector<64x1xf32> to vector<64x64xf32>
    %75 = arith.subf %71, %74 : vector<64x64xf32>
    %76 = math.exp %75 : vector<64x64xf32>
    %cst_30 = arith.constant dense<0.000000e+00> : vector<64xf32>
    %77 = vector.multi_reduction <add>, %76, %cst_30 [1] : vector<64x64xf32> to vector<64xf32>
    %78 = vector.shape_cast %77 : vector<64xf32> to vector<64x1xf32>
    %79 = vector.broadcast %78 : vector<64x1xf32> to vector<64x64xf32>
    %80 = arith.divf %76, %79 : vector<64x64xf32>
    %81 = arith.truncf %80 : vector<64x64xf32> to vector<64x64xbf16>
    %c192 = arith.constant 192 : index
    %c0_31 = arith.constant 0 : index
    %82 = vector.load %arg4[%c192, %c0_31] : memref<256x128xbf16, #tpu.memory_space<vmem>>, vector<64x128xbf16>
    %cst_32 = arith.constant dense<0.000000e+00> : vector<64x128xf32>
    %83 = tpu.matmul %81, %82, %cst_32 {dimension_numbers = #tpu.dot_dimension_numbers<[1], [0], [0], [1], [0, 0, 1, 1], [], []>} : vector<64x64xbf16>, vector<64x128xbf16>, vector<64x128xf32> -> vector<64x128xf32>
    %84 = arith.addf %65, %83 : vector<64x128xf32>
    %c0_33 = arith.constant 0 : index
    %c0_34 = arith.constant 0 : index
    %85 = vector.load %arg5[%c0_33, %c0_34] : memref<1x128xf32, #tpu.memory_space<vmem>>, vector<1x128xf32>
    %86 = vector.broadcast %85 : vector<1x128xf32> to vector<64x128xf32>
    %87 = arith.addf %84, %86 : vector<64x128xf32>
    %c0_35 = arith.constant 0 : index
    %c0_36 = arith.constant 0 : index
    %88 = vector.load %arg7[%c0_35, %c0_36] : memref<64x128xf32, #tpu.memory_space<vmem>>, vector<64x128xf32>
    %89 = arith.mulf %87, %88 : vector<64x128xf32>
    %c127_i32 = arith.constant 127 : i32
    %90 = tpu.dynamic_rotate %87 by %c127_i32 dim 1 : vector<64x128xf32>, i32 -> vector<64x128xf32>
    %c0_37 = arith.constant 0 : index
    %c0_38 = arith.constant 0 : index
    %91 = vector.load %arg8[%c0_37, %c0_38] : memref<64x128xf32, #tpu.memory_space<vmem>>, vector<64x128xf32>
    %92 = arith.mulf %90, %91 : vector<64x128xf32>
    %93 = arith.addf %89, %92 : vector<64x128xf32>
    %c1_i32 = arith.constant 1 : i32
    %94 = tpu.dynamic_rotate %87 by %c1_i32 dim 1 : vector<64x128xf32>, i32 -> vector<64x128xf32>
    %c0_39 = arith.constant 0 : index
    %c0_40 = arith.constant 0 : index
    %95 = vector.load %arg9[%c0_39, %c0_40] : memref<64x128xf32, #tpu.memory_space<vmem>>, vector<64x128xf32>
    %96 = arith.mulf %94, %95 : vector<64x128xf32>
    %97 = arith.addf %93, %96 : vector<64x128xf32>
    %c0_41 = arith.constant 0 : index
    %c0_42 = arith.constant 0 : index
    %98 = vector.load %arg10[%c0_41, %c0_42] : memref<64x128xf32, #tpu.memory_space<vmem>>, vector<64x128xf32>
    tpu.vector_store %arg10[%c0_41, %c0_42], %97 {strides = array<i32>} : memref<64x128xf32, #tpu.memory_space<vmem>>, vector<64x128xf32>,
    return
  }
  func.func @transform_0(%arg0: i32) -> (i32, i32) {
    %c0_i32 = arith.constant 0 : i32
    %c0_i32_0 = arith.constant 0 : i32
    return %arg0, %c0_i32 : i32, i32
  }
  func.func @transform_1(%arg0: i32) -> (i32, i32) {
    %c0_i32 = arith.constant 0 : i32
    %c0_i32_0 = arith.constant 0 : i32
    %c0_i32_1 = arith.constant 0 : i32
    return %c0_i32, %c0_i32_0 : i32, i32
  }
  func.func @transform_2(%arg0: i32) -> (i32, i32) {
    %c0_i32 = arith.constant 0 : i32
    %c0_i32_0 = arith.constant 0 : i32
    %c0_i32_1 = arith.constant 0 : i32
    return %c0_i32, %c0_i32_0 : i32, i32
  }
  func.func @transform_3(%arg0: i32) -> (i32, i32) {
    %c0_i32 = arith.constant 0 : i32
    %c0_i32_0 = arith.constant 0 : i32
    %c0_i32_1 = arith.constant 0 : i32
    return %c0_i32, %c0_i32_0 : i32, i32
  }
  func.func @transform_4(%arg0: i32) -> (i32, i32) {
    %c0_i32 = arith.constant 0 : i32
    %c0_i32_0 = arith.constant 0 : i32
    %c0_i32_1 = arith.constant 0 : i32
    return %c0_i32, %c0_i32_0 : i32, i32
  }
  func.func @transform_5(%arg0: i32) -> (i32, i32) {
    %c0_i32 = arith.constant 0 : i32
    %c0_i32_0 = arith.constant 0 : i32
    %c0_i32_1 = arith.constant 0 : i32
    return %c0_i32, %c0_i32_0 : i32, i32
  }
  func.func @transform_6(%arg0: i32) -> (i32, i32) {
    %c0_i32 = arith.constant 0 : i32
    %c0_i32_0 = arith.constant 0 : i32
    %c0_i32_1 = arith.constant 0 : i32
    return %c0_i32, %c0_i32_0 : i32, i32
  }
  func.func @transform_7(%arg0: i32) -> (i32, i32) {
    %c0_i32 = arith.constant 0 : i32
    %c0_i32_0 = arith.constant 0 : i32
    %c0_i32_1 = arith.constant 0 : i32
    return %c0_i32, %c0_i32_0 : i32, i32
  }
  func.func @transform_8(%arg0: i32) -> (i32, i32) {
    %c0_i32 = arith.constant 0 : i32
    %c0_i32_0 = arith.constant 0 : i32
    %c0_i32_1 = arith.constant 0 : i32
    return %c0_i32, %c0_i32_0 : i32, i32
  }
  func.func @transform_9(%arg0: i32) -> (i32, i32) {
    %c0_i32 = arith.constant 0 : i32
    %c0_i32_0 = arith.constant 0 : i32
    return %arg0, %c0_i32 : i32, i32
  }
}

</mosaic_0001>

<bundles_post_ra>
// kernel: tpu_custom_call.1
= control target key start
LH: loop header
LB: loop body
LE: loop exit
PB: predicated region body
PF: predicated region fallthrough
CT: control target
= control target key end

     0   :  { %s3945_s0 = inlined_call_operand.hbm [shape: bf16[128,128], index: 0, kind: input, shape index: {}]   ;;  %s3946_s1 = inlined_call_operand.hbm [shape: bf16[128,256], index: 1, kind: input, shape index: {}]   ;;  %s3947_s2 = inlined_call_operand.vmem [shape: f32[1,256], index: 2, kind: input, shape index: {}]   ;;  %s3948_s3 = inlined_call_operand.hbm [shape: bf16[256,128], index: 3, kind: input, shape index: {}]   ;;  %s3949_s4 = inlined_call_operand.vmem [shape: f32[1,128], index: 4, kind: input, shape index: {}]   ;;  %s3950_s5 = inlined_call_operand.hbm [shape: f32[64,64], index: 5, kind: input, shape index: {}]   ;;  %s3951_s6 = inlined_call_operand.hbm [shape: f32[64,128], index: 6, kind: input, shape index: {}]   ;;  %s3952_s7 = inlined_call_operand.hbm [shape: f32[64,128], index: 7, kind: input, shape index: {}]   ;;  %s3953_s8 = inlined_call_operand.hbm [shape: f32[64,128], index: 8, kind: input, shape index: {}]   ;;  %s3954_s9 = inlined_call_operand.hbm [shape: f32[128,128], index: 9, kind: output, shape index: {}]  }
   0x1   :  { %3961 = sst [smem:[#allocation20_spill]] %s3946_s1 }
   0x2   :  { %3962 = sst [smem:[#allocation21_spill]] %s3948_s3 }
   0x3   :  { %3963 = sst [smem:[#allocation22_spill]] %s3950_s5 }
   0x4   :  { %14 = vsyncpa [#allocation3], 0 }
   0x5   :  { %16 = vsyncpa [#allocation3 + $0x1], 0 }
   0x6   :  { %17 = vsyncpa [#allocation6], 0 }
   0x7   :  { %18 = vsyncpa [#allocation9], 0 }
   0x8   :  { %19 = vsyncpa [#allocation12], 0 }
   0x9   :  { %20 = vsyncpa [#allocation4], 0 }
   0xa   :  { %22 = vsyncpa [#allocation4 + $0x1], 0  ;;  %s3166_s30 = smov 0   ;;  %s3168_s10 = smov 0  }
   0xb   :  { %s3170_s11 = smov 0   ;;  %s3172_s12 = smov 0  }
   0xc LB: > { %s3096_s13 = smov [#allocation5]   ;;  %s3187_s15 = sadd.s32 4294967295, %s3094_s12   ;;  %s3094_s12 = sphi %s3172_s12, %s3991_s12   ;;  %s3090_s11 = sphi %s3170_s11, %s3990_s11   ;;  %s3086_s10 = sphi %s3168_s10, %s3989_s10   ;;  %s3082_s30 = sphi %s3166_s30, %s3988_s30  }
   0xd   : > { %s265_s14 = sshll.u32 %s3096_s13, 4  ;;  %p2232_p0 = scmp.ge.s32.totalorder %s3094_s12, 1  ;;  %s266_s14 = int_to_ptr.vmem [resolvable:$true] %s265_s14 }
   0xe   : > { %p3957_p1 = scmp.eq.s32.totalorder %s3187_s15, 0  ;;  %p253_p2 = scmp.lt.s32.totalorder %s3094_s12, 3 }
   0xf   : > { %s3097_s17 = smov [#allocation8]   ;;  %s3098_s20 = smov [#allocation11]  }
  0x10   : > { %p3192_p3 = pnand %p2232_p0, %p253_p2  ;;  %s297_s18 = sshll.u32 %s3097_s17, 4  ;;  %s3205_s18 = int_to_ptr.vmem [resolvable:$true] %s297_s18 }
  0x11   : > { %s323_s21 = sshll.u32 %s3098_s20, 4  ;;  %s2845_s23 = scalar_lea.vmem %s266_s14, 2048  ;;  %s3207_s21 = int_to_ptr.vmem [resolvable:$true] %s323_s21 }
  0x12   : > { %s3964_s16 = scalar_select %p3192_p3, 1, 0 }
  0x13   : > { %p2564_p5 = pneg %p3192_p3  ;;  %p2846_p8 = scmp.ne.s32.totalorder %s266_s14, %s2845_s23 }
  0x14   : > { %p2853_p11 = scmp.lt.s32.totalorder %s266_s14, %s266_s14  ;;  %p2854_p12 = scmp.lt.s32.totalorder %s2845_s23, %s2845_s23 }
  0x15   : > { %p3201_p6 = pnand %p2564_p5, %p3957_p1 }
  0x16   : > { %p2855_p13 = por %p2854_p12, %p2853_p11 }
  0x17   : > { %p3211_p7 = pneg %p3201_p6 }
  0x19   : > { %p2848_p9 = pnand %p2846_p8, %p3211_p7 }
  0x1b   : > { %p2849_p10 = pneg %p2848_p9 }
  0x1d   : > { %p2856_p0 = pnand %p2855_p13, %p2849_p10 }
  0x1f   : > { %2859 = shalt.err (!%p2856_p0)
}
  0x20   : > { %s3099_s24 = smov 128   ;;  %s3100_s25 = smov 8  }
  0x21   : > { %s3967_s1 = sld [smem:[#allocation20_spill]]  ;;  %s2871_s28 = scalar_lea.vmem %s3205_s18, 1024 }
  0x22   : > { %p2872_p2 = scmp.ne.s32.totalorder %s3205_s18, %s2871_s28  ;;  %p2879_p9 = scmp.lt.s32.totalorder %s3205_s18, %s3205_s18 }
  0x23   : > { %p2880_p10 = scmp.lt.s32.totalorder %s2871_s28, %s2871_s28 }
  0x24   : > { %p2874_p5 = pnand %p2872_p2, %p3211_p7 }
  0x25   : > { %p2881_p11 = por %p2880_p10, %p2879_p9 }
  0x26   : > { %p2875_p8 = pneg %p2874_p5 }
  0x27   : > { %2567 = dma.hbm_to_vmem [thread:$0]  (!%p3201_p6), %s3967_s1, 2048, %s266_s14, [#allocation6], %s3099_s24, %s3099_s24, %s3100_s25  }
  0x28   : > { %p2882_p12 = pnand %p2881_p11, %p2875_p8 }
  0x2a   : > { %2885 = shalt.err (!%p2882_p12)
}
  0x2b   : > { %s3968_s5 = sld [smem:[#allocation22_spill]]  ;;  %s2897_s14 = scalar_lea.vmem %s3207_s21, 1024 }
  0x2c   : > { %p2898_p13 = scmp.ne.s32.totalorder %s3207_s21, %s2897_s14  ;;  %p2905_p5 = scmp.lt.s32.totalorder %s3207_s21, %s3207_s21 }
  0x2d   : > { %p2906_p8 = scmp.lt.s32.totalorder %s2897_s14, %s2897_s14 }
  0x2e   : > { %p2900_p0 = pnand %p2898_p13, %p3211_p7 }
  0x2f   : > { %p2907_p9 = por %p2906_p8, %p2905_p5 }
  0x30   : > { %p2901_p2 = pneg %p2900_p0 }
  0x31   : > { %2573 = dma.hbm_to_vmem [thread:$0]  (!%p3201_p6), %s3968_s5, 1024, %s3205_s18, [#allocation9], %s3099_s24, %s3099_s24, %s3100_s25  }
  0x32   : > { %p2908_p10 = pnand %p2907_p9, %p2901_p2 }
  0x34   : > { %2911 = shalt.err (!%p2908_p10)
}
  0x35   : > { %2579 = dma.hbm_to_vmem [thread:$0]  (!%p3201_p6), %s3952_s7, 1024, %s3207_s21, [#allocation12], %s3099_s24, %s3099_s24, %s3100_s25  }
  0x36   : > { %s3101_s18 = smov [#allocation7]  }
  0x37   : > { %s281_s23 = sshll.u32 %s3101_s18, 4  ;;  %s282_s23 = int_to_ptr.vmem [resolvable:$true] %s281_s23 }
  0x38   : > { %s2923_s26 = scalar_lea.vmem %s282_s23, 2048  ;;  %p2931_p0 = scmp.lt.s32.totalorder %s282_s23, %s282_s23 }
  0x39   : > { %p2924_p11 = scmp.ne.s32.totalorder %s282_s23, %s2923_s26  ;;  %p2932_p2 = scmp.lt.s32.totalorder %s2923_s26, %s2923_s26 }
  0x3b   : > { %p2926_p12 = pnand %p2924_p11, %p3211_p7  ;;  %p2933_p5 = por %p2932_p2, %p2931_p0 }
  0x3d   : > { %p2927_p13 = pneg %p2926_p12 }
  0x3f   : > { %p2934_p8 = pnand %p2933_p5, %p2927_p13 }
  0x41   : > { %2937 = shalt.err (!%p2934_p8)
}
  0x42   : > { %s3955_s27 = smov 64   ;;  %s3956_s28 = smov 4  }
  0x43   : > { %s3969_s3 = sld [smem:[#allocation21_spill]]  ;;  %s3104_s13 = smov [#allocation10]  }
  0x44   : > { %s310_s14 = sshll.u32 %s3104_s13, 4  ;;  %s3105_s17 = smov [#allocation13]   ;;  %s311_s14 = int_to_ptr.vmem [resolvable:$true] %s310_s14 }
  0x45   : > { %s336_s20 = sshll.u32 %s3105_s17, 4  ;;  %s2949_s18 = scalar_lea.vmem %s311_s14, 1024  ;;  %s337_s20 = int_to_ptr.vmem [resolvable:$true] %s336_s20 }
  0x46   : > { %p2950_p9 = scmp.ne.s32.totalorder %s311_s14, %s2949_s18  ;;  %p2957_p12 = scmp.lt.s32.totalorder %s311_s14, %s311_s14 }
  0x47   : > { %p2958_p13 = scmp.lt.s32.totalorder %s2949_s18, %s2949_s18 }
  0x48   : > { %p2952_p10 = pnand %p2950_p9, %p3211_p7 }
  0x49   : > { %2570 = dma.hbm_to_vmem [thread:$0]  (!%p3201_p6), %s3969_s3, 2048, %s282_s23, [#allocation6], %s3955_s27, %s3955_s27, %s3956_s28  }
  0x4a   : > { %p2953_p11 = pneg %p2952_p10  ;;  %p2959_p0 = por %p2958_p13, %p2957_p12 }
  0x4c   : > { %p2960_p2 = pnand %p2959_p0, %p2953_p11 }
  0x4e   : > { %2963 = shalt.err (!%p2960_p2)
}
  0x4f   : > { %2576 = dma.hbm_to_vmem [thread:$0]  (!%p3201_p6), %s3951_s6, 1024, %s311_s14, [#allocation9], %s3099_s24, %s3099_s24, %s3100_s25  }
  0x50   : > { %s2975_s21 = scalar_lea.vmem %s337_s20, 1024  ;;  %p2983_p10 = scmp.lt.s32.totalorder %s337_s20, %s337_s20 }
  0x51   : > { %p2976_p5 = scmp.ne.s32.totalorder %s337_s20, %s2975_s21  ;;  %p2984_p4 = scmp.lt.s32.totalorder %s2975_s21, %s2975_s21 }
  0x53   : > { %p2978_p8 = pnand %p2976_p5, %p3211_p7  ;;  %p2985_p12 = por %p2984_p4, %p2983_p10 }
  0x55   : > { %p2979_p9 = pneg %p2978_p8 }
  0x57   : > { %p2986_p11 = pnand %p2985_p12, %p2979_p9 }
  0x59   : > { %2989 = shalt.err (!%p2986_p11)
}
  0x5a   : > { %2582 = dma.hbm_to_vmem [thread:$0]  (!%p3201_p6), %s3953_s8, 1024, %s337_s20, [#allocation12], %s3099_s24, %s3099_s24, %s3100_s25  }
  0x5b   : > { %s2231_s19 = sadd.s32 4294967294, %s3094_s12   ;;  %s3287_s22 = sadd.s32 1, %s3094_s12  }
  0x5c   : > { %s32_s14 = ssub.s32 %s3094_s12, %s3287_s22  ;;  %s35_s17 = sadd.s32 1, %s3090_s11 }
  0x5d   : > { %p33_p4 = scmp.eq.s32.totalorder %s32_s14, 0  ;;  %p42_p7 = scmp.ne.s32.totalorder %s3090_s11, %s3086_s10 }
  0x5e   : > { %p43_p13 = scmp.eq.s32.totalorder %s3094_s12, 0  ;;  %p48_p0 = scmp.ne.s32.totalorder %s3086_s10, %s3082_s30 }
  0x5f   : > { %s3298_s18 = scalar_select %p33_p4, %s3090_s11, %s35_s17  }
  0x60   : > { %p3300_p2 = por %p43_p13, %p42_p7  ;;  %p3306_p6 = por %p3957_p1, %p48_p0 }
  0x61   : > { %p240_p5 = scmp.eq.s32.totalorder %s3187_s15, 1  ;;  %p246_p8 = scmp.eq.s32.totalorder %s2231_s19, 1 }
  0x62   : > { %s3971_s24 = scalar_select %p3306_p6, 1, 0 }
  0x63   : > { %p2597_p9 = scmp.lt.s32.totalorder %s3094_s12, 2  ;;  %s350_s25 = sand.u32 1, %s3090_s11  }
  0x64   : > { %p3313_p10 = por %p240_p5, %p42_p7  ;;  %p3317_p12 = por %p246_p8, %p48_p0 }
  0x65   : > { %s2240_s21 = sshll.u32 %s350_s25, 5  ;;  %s2326_s29 = sshll.u32 %s3094_s12, 9 }
  0x66   : > { %s3972_s20 = scalar_select %p3313_p10, 1, 0 }
  0x67   : > { %s3973_s26 = scalar_select %p3317_p12, 1, 0 }
  0x68   : > { %s3325_s17 = scalar_lea.hbm %s3945_s0, %s2326_s29  ;;  %s354_s19 = scalar_lea.vmem [#allocation2], %s2240_s21 }
  0x69   : > { %s361_s27 = sshll.u32 %s354_s19, 4  ;;  %p3331_p11 = pnand %p2597_p9, %p3300_p2  ;;  %s3327_s27 = int_to_ptr.vmem [resolvable:$true] %s361_s27 }
  0x6a   : > { %s3335_s1 = scalar_lea.sflag [#allocation3], %s350_s25  ;;  %s2990_s3 = scalar_lea.hbm %s3325_s17, 512 }
  0x6b   : > { %p2991_p4 = scmp.ne.s32.totalorder %s3325_s17, %s2990_s3  ;;  %p2992_p7 = pneg %p3331_p11 }
  0x6c   : > { %s2995_s21 = scalar_lea.hbm %s3945_s0, 1024  ;;  %p2996_p2 = scmp.lt.s32.totalorder %s3325_s17, %s3945_s0 }
  0x6d   : > { %p2993_p13 = pnand %p2992_p7, %p2991_p4  ;;  %p2997_p5 = scmp.lt.s32.totalorder %s2995_s21, %s2990_s3 }
  0x6f   : > { %p2994_p0 = pneg %p2993_p13  ;;  %p2998_p8 = por %p2997_p5, %p2996_p2 }
  0x71   : > { %p2999_p9 = pnand %p2998_p8, %p2994_p0 }
  0x73   : > { %3002 = shalt.err (!%p2999_p9)
}
  0x74   : > { %s3003_s23 = scalar_lea.vmem %s3327_s27, 512  ;;  %s3106_s25 = smov [#allocation2]  }
  0x75   : > { %p3004_p1 = scmp.ne.s32.totalorder %s3327_s27, %s3003_s23  ;;  %s3008_s5 = sshll.u32 %s3106_s25, 4  ;;  %s3009_s5 = int_to_ptr.vmem [resolvable:$false] %s3008_s5 }
  0x76   : > { %s3010_s29 = scalar_lea.vmem %s3009_s5, 1024  ;;  %p3011_p13 = scmp.lt.s32.totalorder %s3327_s27, %s3009_s5 }
  0x77   : > { %p3006_p12 = pnand %p3004_p1, %p2992_p7  ;;  %p3012_p10 = scmp.lt.s32.totalorder %s3010_s29, %s3003_s23 }
  0x79   : > { %p3007_p4 = pneg %p3006_p12  ;;  %p3013_p6 = por %p3012_p10, %p3011_p13 }
  0x7b   : > { %p3014_p3 = pnand %p3013_p6, %p3007_p4 }
  0x7d   : > { %3017 = shalt.err (!%p3014_p3)
}
  0x7e   : > { %s3975_s3 = smov 4   ;;  %s3976_s13 = smov 64  }
  0x7f   : > { %2586 = dma.hbm_to_vmem [thread:$0]  (!%p3331_p11), %s3325_s17, 512, %s3327_s27, %s3335_s1, %s3976_s13, %s3976_s13, %s3975_s3  }
  0x80   : > { %p3977_p1 = scmp.ne.s32.totalorder %s3964_s16, 0 }
  0x81   : > { %s3362_s21 = sand.u32 (!%p3977_p1), 1, %s3086_s10   ;;  %p3978_p3 = scmp.ne.s32.totalorder (!%p3977_p1), %s3971_s24, 0 }
  0x82   : > { %373 = sbr.rel (%p3977_p1) target bundleno = 2068 (0x814), region = 56  ;;  %s2244_s5 = sshll.u32 (!%p3977_p1), %s3362_s21, 5 }
  0x83   : > { %s376_s14 = scalar_lea.sflag (!%p3977_p1), [#allocation3], %s3362_s21  ;;  %s3366_s19 = scalar_lea.vmem (!%p3977_p1), [#allocation2], %s2244_s5 }
  0x87   : > { %3061 = dma.done.wait (%p3978_p3), %s376_s14, 512  }
  0x88   : > { %3063 = vsyncadd (%p3978_p3), %s376_s14, 4294966784  ;;  %p3979_p6 = scmp.eq.s32.totalorder %s3187_s15, 0 }
  0x8a   : > { %3065 = dma.done.wait (%p3979_p6), [#allocation6], 4096   ;;  %p3980_p10 = pmov %p3979_p6 }
  0x8b   : > { %p3981_p12 = pmov %p3979_p6 }
  0x8c   : > { %3067 = vsyncadd (%p3980_p10), [#allocation6], 4294963200 }
  0x8d   : > { %3069 = dma.done.wait (%p3981_p12), [#allocation9], 2048   ;;  %p3982_p11 = pmov %p3979_p6 }
  0x8e   : > { %p3983_p7 = pmov %p3979_p6 }
  0x8f   : > { %3071 = vsyncadd (%p3982_p11), [#allocation9], 4294965248 }
  0x90   : > { %3073 = dma.done.wait (%p3983_p7), [#allocation12], 2048   ;;  %p3984_p0 = pmov %p3979_p6 }
  0x91   : > { %v3107_v0 = vmov 0   ;;  %v2655_v1 = vld [vmem:[#allocation5 + $0x74] ss:$8 sps:$4 sm:$0xff]   ;;  %v2657_v2 = vld [vmem:[#allocation5 + $0x70] ss:$8 sps:$4 sm:$0xff]   ;;  %v2679_v17 = vld [vmem:[%s3366_s19] sm:$0xff]   ;;  %v467_v21 = vlaneseq }
  0x92   : > { %3075 = vsyncadd (%p3984_p0), [#allocation12], 4294965248  ;;  %613 = vmatprep.mubr.bf16.mxu0 %v3107_v0  ;;  %581 = vmatprep.subr.bf16.mxu0 %v2655_v1  ;;  %v2658_v3 = vld [vmem:[#allocation5 + $0x64] ss:$8 sps:$4 sm:$0xff]   ;;  %v2660_v4 = vld [vmem:[#allocation5 + $0x60] ss:$8 sps:$4 sm:$0xff]  }
  0x93   : > { %582 = vmatpush1.bf16.msra.mxu0 %v2657_v2  ;;  %v2661_v5 = vld [vmem:[#allocation5 + $0x54] ss:$8 sps:$4 sm:$0xff]   ;;  %v2663_v6 = vld [vmem:[#allocation5 + $0x50] ss:$8 sps:$4 sm:$0xff]   ;;  %v2664_v7 = vld [vmem:[#allocation5 + $0x44] ss:$8 sps:$4 sm:$0xff]  }
  0x94   : > { %583 = vmatprep.subr.bf16.mxu0 %v2658_v3  ;;  %v2666_v8 = vld [vmem:[#allocation5 + $0x40] ss:$8 sps:$4 sm:$0xff]   ;;  %v2667_v9 = vld [vmem:[#allocation5 + $0x34] ss:$8 sps:$4 sm:$0xff]   ;;  %v2669_v10 = vld [vmem:[#allocation5 + $0x30] ss:$8 sps:$4 sm:$0xff]  }
  0x95   : > { %v2670_v11 = vld [vmem:[#allocation5 + $0x24] ss:$8 sps:$4 sm:$0xff]   ;;  %v2672_v12 = vld [vmem:[#allocation5 + $0x20] ss:$8 sps:$4 sm:$0xff]   ;;  %v2673_v13 = vld [vmem:[#allocation5 + $0x14] ss:$8 sps:$4 sm:$0xff]  }
  0x96   : > { %v2675_v14 = vld [vmem:[#allocation5 + $0x10] ss:$8 sps:$4 sm:$0xff]   ;;  %v2676_v15 = vld [vmem:[#allocation5 + $0x4] ss:$8 sps:$4 sm:$0xff]   ;;  %v2678_v16 = vld [vmem:[#allocation5] ss:$8 sps:$4 sm:$0xff]  }
  0x97   : > { %584 = vmatpush1.bf16.msra.mxu0 %v2660_v4  ;;  %v2680_v18 = vld [vmem:[%s3366_s19 + $0x8] sm:$0xff]   ;;  %v2681_v19 = vld [vmem:[%s3366_s19 + $0x10] sm:$0xff]   ;;  %v2682_v20 = vld [vmem:[%s3366_s19 + $0x18] sm:$0xff]   ;;  %v468_v22 = vshrl.u32 %v467_v21, 7  ;;  %vm670_vm0 = vcmask 261120   ;;  %s3108_s27 = smov 96  }
  0x98   : > { %585 = vmatprep.subr.bf16.mxu0 %v2661_v5  ;;  %v465_v24 = vld [vmem:[%s3947_s2] sm:$0x3]  ;;  %s3109_s28 = smov 64   ;;  %vm776_vm1 = vcmask 523264   ;;  %s3110_s24 = smov 32  }
  0x99   : > { %v469_v23 = vsub.s32 0, %v468_v22  ;;  %v473_v34 = vsub.s32 1, %v468_v22  ;;  %s3111_s25 = smov 1   ;;  %s3112_s29 = smov 127  }
  0x9a   : > { %s2251_s3 = sshll.u32 %s3362_s21, 6  ;;  %s2327_s14 = sshll.u32 %s3187_s15, 10 }
  0x9b   : > { %586 = vmatpush1.bf16.msra.mxu0 %v2663_v6  ;;  %v470_v26 = vrot.slane %v465_v24, %v469_v23  ;;  %v474_v37 = vrot.slane %v465_v24, %v473_v34  ;;  %s3880_s13 = scalar_lea.vmem [#allocation14], %s2251_s3  ;;  %s3901_s16 = scalar_lea.hbm %s3954_s9, %s2327_s14 }
  0x9c   : > { %587 = vmatprep.subr.bf16.mxu0 %v2664_v7  ;;  %s2101_s5 = sshll.u32 %s3880_s13, 4  ;;  %p3985_p5 = scmp.ne.s32.totalorder %s3972_s20, 0  ;;  %s3895_s5 = int_to_ptr.vmem [resolvable:$true] %s2101_s5 }
  0x9d   : > { %s3113_s15 = smov [#allocation14]  }
  0x9f   : > { %588 = vmatpush1.bf16.msra.mxu0 %v2666_v8 }
  0xa0   : > { %589 = vmatprep.subr.bf16.mxu0 %v2667_v9 }
  0xa3   : > { %590 = vmatpush1.bf16.msra.mxu0 %v2669_v10 }
  0xa4   : > { %591 = vmatprep.subr.bf16.mxu0 %v2670_v11 }
  0xa7   : > { %592 = vmatpush1.bf16.msra.mxu0 %v2672_v12 }
  0xa8   : > { %593 = vmatprep.subr.bf16.mxu0 %v2673_v13 }
  0xab   : > { %594 = vmatpush1.bf16.msra.mxu0 %v2675_v14 }
  0xac   : > { %595 = vmatprep.subr.bf16.mxu0 %v2676_v15 }
  0xaf   : > { %596 = vmatpush1.bf16.msra.mxu0 %v2678_v16 }
  0xb2   : > { %614 = vmatmul.mubr.bf16.vlgmr.msra.gmra.mxu0 %v2679_v17 }
  0xb3   : > { %623 = vmatprep.mubr.bf16.mxu0 %v3107_v0 }
  0xba   : > { %624 = vmatmul.mubr.bf16.gmra.mxu0 %v2680_v18 }
  0xbb   : > { %633 = vmatprep.mubr.bf16.mxu0 %v3107_v0 }
  0xc2   : > { %634 = vmatmul.mubr.bf16.gmra.mxu0 %v2681_v19 }
  0xc3   : > { %643 = vmatprep.mubr.bf16.mxu0 %v3107_v0 }
  0xca   : > { %644 = vmatmul.mubr.bf16.gmra.mxu0 %v2682_v20 }
 0x172   : > { %v615_v25 = vpop.f32.mrf.mxu0 }
 0x173   : > { %v616_v29 = vadd.f32 %v615_v25, %v470_v26 }
 0x174   : > { %v617_v27 = vpop.f32.mrf.mxu0 }
 0x175   : > { %v618_v45 = vadd.f32 %v617_v27, %v474_v37 }
 0x176   : > { %v619_v28 = vpop.f32.mrf.mxu0 }
 0x177   : > { %v620_v30 = vadd.f32 %v619_v28, %v470_v26 }
 0x178   : > { %v621_v31 = vpop.f32.mrf.mxu0 }
 0x179   : > { %v3391_v32 = vpack.c.bf16 %v620_v30, %v616_v29  ;;  %v622_v42 = vadd.f32 %v621_v31, %v474_v37 }
 0x17a   : > { %v625_v33 = vpop.f32.mrf.mxu0 }
 0x17b   : > { %2400 = vmatprep.mubr.msk.bf16.mxu1 %vm670_vm0, %v3391_v32  ;;  %v3399_v47 = vpack.c.bf16 %v622_v42, %v618_v45  ;;  %v626_v50 = vadd.f32 %v625_v33, %v470_v26 }
 0x17c   : > { %v627_v35 = vpop.f32.mrf.mxu0 }
 0x17d   : > { %v628_v39 = vadd.f32 %v627_v35, %v474_v37  ;;  %v684_v7 = vsel %vm670_vm0, %v3399_v47, 0 }
 0x17e   : > { %v629_v36 = vpop.f32.mrf.mxu0 }
 0x17f   : > { %v630_v48 = vadd.f32 %v629_v36, %v470_v26 }
 0x180   : > { %v631_v38 = vpop.f32.mrf.mxu0 }
 0x181   : > { %v632_v40 = vadd.f32 %v631_v38, %v474_v37  ;;  %v3403_v52 = vpack.c.bf16 %v630_v48, %v626_v50  ;;  %v3479_v38 = vld [vmem:[#allocation8 + $0x10] sm:$0xff] }
 0x182   : > { %v635_v41 = vpop.f32.mrf.mxu0 }
 0x183   : > { %v3395_v43 = vpack.c.bf16 %v632_v40, %v628_v39  ;;  %v636_v55 = vadd.f32 %v635_v41, %v470_v26 }
 0x184   : > { %v637_v44 = vpop.f32.mrf.mxu0 }
 0x185   : > { %895 = vrot.lane.b32.xlu1 %v3395_v43, %s3108_s27  ;;  %v638_v62 = vadd.f32 %v637_v44, %v474_v37  ;;  %v687_v6 = vsel %vm670_vm0, %v3395_v43, 0  ;;  %v3484_v44 = vld [vmem:[#allocation8] sm:$0xff] }
 0x186   : > { %v639_v46 = vpop.f32.mrf.mxu0 }
 0x187   : > { %v640_v53 = vadd.f32 %v639_v46, %v470_v26 }
 0x188   : > { %v641_v49 = vpop.f32.mrf.mxu0 }
 0x189   : > { %893 = vrot.lane.b32.xlu1 %v3399_v47, %s3108_s27  ;;  %v3407_v57 = vpack.c.bf16 %v640_v53, %v636_v55  ;;  %v642_v58 = vadd.f32 %v641_v49, %v474_v37  ;;  %v3493_v55 = vld [vmem:[#allocation8 + $0x18] sm:$0xff] }
 0x18a   : > { %v645_v51 = vpop.f32.mrf.mxu0 }
 0x18b   : > { %v3413_v0 = vpack.c.bf16 %v642_v58, %v638_v62  ;;  %v646_v4 = vadd.f32 %v645_v51, %v470_v26  ;;  %v3503_v62 = vld [vmem:[#allocation8 + $0x30] sm:$0xff] }
 0x18c   : > { %v647_v54 = vpop.f32.mrf.mxu0 }
 0x18d   : > { %883 = vrot.lane.b32.xlu1 %v3403_v52, %s3108_s27  ;;  %v648_v60 = vadd.f32 %v647_v54, %v474_v37  ;;  %v690_v3 = vsel %vm670_vm0, %v3413_v0, 0  ;;  %v3491_v54 = vld [vmem:[#allocation8 + $0x8] sm:$0xff] }
 0x18e   : > { %v649_v56 = vpop.f32.mrf.mxu0 }
 0x18f   : > { %v650_v2 = vadd.f32 %v649_v56, %v470_v26 }
 0x190   : > { %v651_v59 = vpop.f32.mrf.mxu0 }
 0x191   : > { %v652_v61 = vadd.f32 %v651_v59, %v474_v37  ;;  %885 = vrot.lane.b32.xlu1 %v3407_v57, %s3108_s27  ;;  %v3434_v5 = vpack.c.bf16 %v650_v2, %v646_v4 }
 0x193   : > { %v3411_v63 = vpack.c.bf16 %v652_v61, %v648_v60 }
 0x195   : > { %899 = vrot.lane.b32.xlu0 %v3411_v63, %s3108_s27  ;;  %2520 = vmatprep.subr.msk.bf16.mxu1 %vm670_vm0, %v3411_v63  ;;  %v693_v1 = vsel %vm670_vm0, %v3411_v63, 0 }
 0x196   : > { %1320 = vrot.lane.b32.xlu1 %v3413_v0, %s3109_s28  ;;  %2393 = vmatpush3.bf16.xpose.msra.mxu1 %v693_v1 }
 0x197   : > { %2521 = vmatprep.subr.msk.bf16.mxu1 %vm670_vm0, %v3413_v0 }
 0x199   : > { %897 = vrot.lane.b32.xlu0 %v3413_v0, %s3108_s27 }
 0x19a   : > { %1316 = vrot.lane.b32.xlu1 %v3399_v47, %s3109_s28 }
 0x19d   : > { %881 = vrot.lane.b32.xlu0 %v3391_v32, %s3108_s27 }
 0x19e   : > { %1310 = vrot.lane.b32.xlu1 %v3403_v52, %s3109_s28  ;;  %2395 = vmatpush3.bf16.xpose.msra.mxu1 %v690_v3 }
 0x19f   : > { %2522 = vmatprep.subr.msk.bf16.mxu1 %vm670_vm0, %v3395_v43 }
 0x1a1   : > { %1322 = vrot.lane.b32.xlu0 %v3411_v63, %s3109_s28 }
 0x1a2   : > { %1314 = vrot.lane.b32.xlu1 %v3434_v5, %s3109_s28 }
 0x1a5   : > { %887 = vrot.lane.b32.xlu0 %v3434_v5, %s3108_s27  ;;  %s2088_s27 = scalar_lea.sflag [#allocation4], %s3362_s21 }
 0x1a6   : > { %2397 = vmatpush3.bf16.xpose.msra.mxu1 %v687_v6 }
 0x1a7   : > { %2523 = vmatprep.subr.msk.bf16.mxu1 %vm670_vm0, %v3399_v47 }
 0x1a9   : > { %1318 = vrot.lane.b32.xlu0 %v3395_v43, %s3109_s28 }
 0x1ad   : > { %1308 = vrot.lane.b32.xlu0 %v3391_v32, %s3109_s28 }
 0x1ae   : > { %2399 = vmatpush3.bf16.xpose.msra.mxu1 %v684_v7 }
 0x1b1   : > { %1312 = vrot.lane.b32.xlu0 %v3407_v57, %s3109_s28  ;;  %s3018_s28 = scalar_lea.vmem %s3895_s5, 1024 }
 0x1b2   : > { %p3019_p2 = scmp.ne.s32.totalorder %s3895_s5, %s3018_s28 }
 0x1b4   : > { %p3020_p8 = pnand %p3019_p2, %p3985_p5 }
 0x1b5   : > { %2401 = vmatmul.mubr.msk.bf16.vlgmr.msra.gmra.mxu1 %vm670_vm0, %v3403_v52 }
 0x1b6   : > { %2404 = vmatprep.mubr.msk.bf16.mxu1 %vm670_vm0, %v3407_v57  ;;  %p3021_p9 = pneg %p3020_p8 }
 0x1bd   : > { %2405 = vmatmul.mubr.msk.bf16.gmra.mxu1 %vm670_vm0, %v3434_v5 }
 0x1f7   : > { %v896_v13 = vpop.permute.xlu1 %895 }
 0x1f8   : > { %v917_v15 = vsel %vm670_vm0, %v896_v13, 0 }
 0x1fb   : > { %v894_v14 = vpop.permute.xlu1 %893 }
 0x1fc   : > { %v914_v18 = vsel %vm670_vm0, %v894_v14, 0 }
 0x1ff   : > { %v884_v16 = vpop.permute.xlu1 %883 }
 0x203   : > { %v886_v19 = vpop.permute.xlu1 %885 }
 0x207   : > { %v900_v8 = vpop.permute.xlu0 %899 }
 0x208   : > { %2524 = vmatprep.subr.msk.bf16.mxu0 %vm670_vm0, %v900_v8  ;;  %v923_v9 = vsel %vm670_vm0, %v900_v8, 0  ;;  %v1321_v22 = vpop.permute.xlu1 %1320 }
 0x209   : > { %2409 = vmatpush3.bf16.xpose.msra.mxu0 %v923_v9  ;;  %v1343_v24 = vsel %vm670_vm0, %v1321_v22, 0 }
 0x20b   : > { %v898_v10 = vpop.permute.xlu0 %897 }
 0x20c   : > { %2525 = vmatprep.subr.msk.bf16.mxu0 %vm670_vm0, %v898_v10  ;;  %v920_v12 = vsel %vm670_vm0, %v898_v10, 0  ;;  %v1317_v27 = vpop.permute.xlu1 %1316  ;;  %v3512_v10 = vld [vmem:[#allocation8 + $0x20] sm:$0xff] }
 0x20d   : > { %v1337_v28 = vsel %vm670_vm0, %v1317_v27, 0 }
 0x20f   : > { %v882_v11 = vpop.permute.xlu0 %881 }
 0x210   : > { %2416 = vmatprep.mubr.msk.bf16.mxu0 %vm670_vm0, %v882_v11  ;;  %v1311_v29 = vpop.permute.xlu1 %1310 }
 0x211   : > { %2411 = vmatpush3.bf16.xpose.msra.mxu0 %v920_v12 }
 0x212   : > { %2526 = vmatprep.subr.msk.bf16.mxu0 %vm670_vm0, %v896_v13 }
 0x213   : > { %v1323_v17 = vpop.permute.xlu0 %1322 }
 0x214   : > { %v1346_v21 = vsel %vm670_vm0, %v1323_v17, 0  ;;  %v1315_v31 = vpop.permute.xlu1 %1314 }
 0x217   : > { %v888_v20 = vpop.permute.xlu0 %887 }
 0x219   : > { %2413 = vmatpush3.bf16.xpose.msra.mxu0 %v917_v15 }
 0x21a   : > { %2527 = vmatprep.subr.msk.bf16.mxu0 %vm670_vm0, %v894_v14 }
 0x21b   : > { %v1319_v23 = vpop.permute.xlu0 %1318 }
 0x21c   : > { %v1340_v26 = vsel %vm670_vm0, %v1319_v23, 0 }
 0x21f   : > { %v1309_v25 = vpop.permute.xlu0 %1308 }
 0x221   : > { %2415 = vmatpush3.bf16.xpose.msra.mxu0 %v914_v18 }
 0x222   : > { %2528 = vmatprep.subr.msk.bf16.mxu0 %vm670_vm0, %v1323_v17 }
 0x223   : > { %v1313_v30 = vpop.permute.xlu0 %1312 }
 0x228   : > { %2417 = vmatmul.mubr.msk.bf16.vlgmr.msra.gmra.mxu0 %vm670_vm0, %v884_v16  ;;  %v3519_v16 = vld [vmem:[#allocation8 + $0x28] sm:$0xff] }
 0x229   : > { %2420 = vmatprep.mubr.msk.bf16.mxu0 %vm670_vm0, %v886_v19  ;;  %2457 = vmatpush3.bf16.xpose.msra.mxu0 %v1346_v21  ;;  %v3524_v19 = vld [vmem:[#allocation8 + $0x38] sm:$0xff] }
 0x22a   : > { %2529 = vmatprep.subr.msk.bf16.mxu0 %vm670_vm0, %v1321_v22 }
 0x230   : > { %2421 = vmatmul.mubr.msk.bf16.gmra.mxu0 %vm670_vm0, %v888_v20 }
 0x231   : > { %2459 = vmatpush3.bf16.xpose.msra.mxu0 %v1343_v24  ;;  %2464 = vmatprep.mubr.msk.bf16.mxu0 %vm670_vm0, %v1309_v25 }
 0x232   : > { %2530 = vmatprep.subr.msk.bf16.mxu0 %vm670_vm0, %v1319_v23 }
 0x239   : > { %2461 = vmatpush3.bf16.xpose.msra.mxu0 %v1340_v26 }
 0x23a   : > { %2531 = vmatprep.subr.msk.bf16.mxu0 %vm670_vm0, %v1317_v27 }
 0x241   : > { %2463 = vmatpush3.bf16.xpose.msra.mxu0 %v1337_v28 }
 0x248   : > { %2465 = vmatmul.mubr.msk.bf16.vlgmr.msra.gmra.mxu0 %vm670_vm0, %v1311_v29 }
 0x249   : > { %2468 = vmatprep.mubr.msk.bf16.mxu0 %vm670_vm0, %v1313_v30 }
 0x250   : > { %2469 = vmatmul.mubr.msk.bf16.gmra.mxu0 %vm670_vm0, %v1315_v31 }
 0x275   : > { %v2402_v33 = vpop.f32.mrf.mxu1 }
 0x276   : > { %v762_v18 = vmul.f32 0.17677669, %v2402_v33 }
 0x277   : > { %v729_v34 = vpop.f32.mrf.mxu1 }
 0x278   : > { %v760_v8 = vmul.f32 0.17677669, %v729_v34  ;;  %v3537_v27 = vadd.f32 %v762_v18, %v3479_v38 }
 0x279   : > { %v2403_v41 = vpop.f32.mrf.mxu1 }
 0x27a   : > { %v3527_v20 = vadd.f32 %v760_v8, %v3484_v44  ;;  %v763_v26 = vmul.f32 0.17677669, %v2403_v41 }
 0x27b   : > { %v732_v51 = vpop.f32.mrf.mxu1 }
 0x27c   : > { %v761_v21 = vmul.f32 0.17677669, %v732_v51  ;;  %v777_v30 = vsel %vm776_vm1, %v3527_v20, -inf }
 0x27d   : > { %v2406_v4 = vpop.f32.mrf.mxu1 }
 0x27e   : > { %v3544_v31 = vadd.f32 %v761_v21, %v3491_v54  ;;  %v766_v34 = vmul.f32 0.17677669, %v2406_v4 }
 0x27f   : > { %v745_v15 = vpop.f32.mrf.mxu1 }
 0x280   : > { %v764_v28 = vmul.f32 0.17677669, %v745_v15 }
 0x281   : > { %v2407_v25 = vpop.f32.mrf.mxu1 }
 0x282   : > { %v3554_v41 = vadd.f32 %v764_v28, %v3512_v10 }
 0x283   : > { %v748_v33 = vpop.f32.mrf.mxu1 }
 0x2e8   : > { %v2418_v35 = vpop.f32.mrf.mxu0 }
 0x2e9   : > { %v992_v36 = vmul.f32 0.17677669, %v2418_v35  ;;  %v783_v35 = vsel %vm776_vm1, %v3537_v27, -inf }
 0x2ea   : > { %v959_v37 = vpop.f32.mrf.mxu0 }
 0x2eb   : > { %v990_v39 = vmul.f32 0.17677669, %v959_v37  ;;  %v3482_v40 = vadd.f32 %v992_v36, %v3479_v38  ;;  %v765_v36 = vmul.f32 0.17677669, %v748_v33  ;;  %v780_v37 = vsel %vm776_vm1, %v3544_v31, -inf }
 0x2ec   : > { %v2419_v42 = vpop.f32.mrf.mxu0 }
 0x2ed   : > { %v993_v45 = vmul.f32 0.17677669, %v2419_v42  ;;  %v1012_v46 = vsel %vm776_vm1, %v3482_v40, -inf  ;;  %v3489_v48 = vadd.f32 %v990_v39, %v3484_v44  ;;  %v3551_v39 = vadd.f32 %v763_v26, %v3493_v55 }
 0x2ee   : > { %1013 = vmax.xlane.f32.xlu0 %v1012_v46  ;;  %v962_v49 = vpop.f32.mrf.mxu0  ;;  %v3557_v42 = vadd.f32 %v766_v34, %v3503_v62 }
 0x2ef   : > { %v991_v50 = vmul.f32 0.17677669, %v962_v49  ;;  %v1006_v58 = vsel %vm776_vm1, %v3489_v48, -inf  ;;  %v3501_v60 = vadd.f32 %v993_v45, %v3493_v55  ;;  %v767_v45 = vmul.f32 0.17677669, %v2407_v25 }
 0x2f0   : > { %v2422_v53 = vpop.f32.mrf.mxu0  ;;  %v786_v46 = vsel %vm776_vm1, %v3551_v39, -inf  ;;  %v789_v49 = vsel %vm776_vm1, %v3554_v41, -inf }
 0x2f1   : > { %v996_v56 = vmul.f32 0.17677669, %v2422_v53  ;;  %v3498_v59 = vadd.f32 %v991_v50, %v3491_v54  ;;  %v1015_v7 = vsel %vm776_vm1, %v3501_v60, -inf  ;;  %v3564_v50 = vadd.f32 %v765_v36, %v3519_v16 }
 0x2f2   : > { %1007 = vmax.xlane.f32.xlu0 %v1006_v58  ;;  %v975_v61 = vpop.f32.mrf.mxu0  ;;  %v795_v58 = vsel %vm776_vm1, %v3557_v42, -inf  ;;  %v3574_v4 = vadd.f32 %v767_v45, %v3524_v19 }
 0x2f3   : > { %v994_v1 = vmul.f32 0.17677669, %v975_v61  ;;  %v1009_v2 = vsel %vm776_vm1, %v3498_v59, -inf  ;;  %v3508_v3 = vadd.f32 %v996_v56, %v3503_v62 }
 0x2f4   : > { %1010 = vmax.xlane.f32.xlu1 %v1009_v2  ;;  %v2423_v6 = vpop.f32.mrf.mxu0 }
 0x2f5   : > { %v997_v11 = vmul.f32 0.17677669, %v2423_v6  ;;  %v1024_v13 = vsel %vm776_vm1, %v3508_v3, -inf  ;;  %v3517_v14 = vadd.f32 %v994_v1, %v3512_v10  ;;  %v792_v1 = vsel %vm776_vm1, %v3564_v50, -inf }
 0x2f6   : > { %1016 = vmax.xlane.f32.xlu0 %v1015_v7  ;;  %v978_v9 = vpop.f32.mrf.mxu0 }
 0x2f7   : > { %v995_v12 = vmul.f32 0.17677669, %v978_v9  ;;  %v1018_v22 = vsel %vm776_vm1, %v3517_v14, -inf  ;;  %v3534_v24 = vadd.f32 %v997_v11, %v3524_v19 }
 0x2f8   : > { %1025 = vmax.xlane.f32.xlu1 %v1024_v13 }
 0x2f9   : > { %v3522_v17 = vadd.f32 %v995_v12, %v3519_v16  ;;  %v1027_v29 = vsel %vm776_vm1, %v3534_v24, -inf  ;;  %v798_v12 = vsel %vm776_vm1, %v3574_v4, -inf }
 0x2fb   : > { %v1021_v23 = vsel %vm776_vm1, %v3522_v17, -inf }
 0x2fc   : > { %1019 = vmax.xlane.f32.xlu1 %v1018_v22  ;;  %1022 = vmax.xlane.f32.xlu0 %v1021_v23 }
 0x300   : > { %1028 = vmax.xlane.f32.xlu0 %v1027_v29  ;;  %778 = vmax.xlane.f32.xlu1 %v777_v30 }
 0x304   : > { %784 = vmax.xlane.f32.xlu1 %v783_v35  ;;  %781 = vmax.xlane.f32.xlu0 %v780_v37 }
 0x308   : > { %v2466_v51 = vpop.f32.mrf.mxu0  ;;  %787 = vmax.xlane.f32.xlu0 %v786_v46  ;;  %790 = vmax.xlane.f32.xlu1 %v789_v49 }
 0x309   : > { %v1415_v53 = vmul.f32 0.17677669, %v2466_v51 }
 0x30a   : > { %v1382_v56 = vpop.f32.mrf.mxu0 }
 0x30b   : > { %v1413_v61 = vmul.f32 0.17677669, %v1382_v56  ;;  %v3571_v2 = vadd.f32 %v1415_v53, %v3479_v38 }
 0x30c   : > { %v2467_v6 = vpop.f32.mrf.mxu0  ;;  %796 = vmax.xlane.f32.xlu1 %v795_v58  ;;  %793 = vmax.xlane.f32.xlu0 %v792_v1 }
 0x30d   : > { %v1416_v7 = vmul.f32 0.17677669, %v2467_v6  ;;  %v1435_v11 = vsel %vm776_vm1, %v3571_v2, -inf  ;;  %v3581_v13 = vadd.f32 %v1413_v61, %v3484_v44 }
 0x30e   : > { %v1385_v8 = vpop.f32.mrf.mxu0 }
 0x30f   : > { %v1414_v9 = vmul.f32 0.17677669, %v1385_v8  ;;  %v3587_v22 = vadd.f32 %v1416_v7, %v3493_v55  ;;  %v1429_v25 = vsel %vm776_vm1, %v3581_v13, -inf }
 0x310   : > { %v2470_v38 = vpop.f32.mrf.mxu0  ;;  %1436 = vmax.xlane.f32.xlu1 %v1435_v11  ;;  %799 = vmax.xlane.f32.xlu0 %v798_v12 }
 0x311   : > { %v1419_v15 = vmul.f32 0.17677669, %v2470_v38  ;;  %v3584_v18 = vadd.f32 %v1414_v9, %v3491_v54  ;;  %v1438_v54 = vsel %vm776_vm1, %v3587_v22, -inf }
 0x312   : > { %v1398_v21 = vpop.f32.mrf.mxu0 }
 0x313   : > { %v1417_v23 = vmul.f32 0.17677669, %v1398_v21  ;;  %v1432_v26 = vsel %vm776_vm1, %v3584_v18, -inf  ;;  %v3594_v44 = vadd.f32 %v1419_v15, %v3503_v62 }
 0x314   : > { %v2471_v28 = vpop.f32.mrf.mxu0  ;;  %1430 = vmax.xlane.f32.xlu1 %v1429_v25  ;;  %1433 = vmax.xlane.f32.xlu0 %v1432_v26 }
 0x315   : > { %v1420_v30 = vmul.f32 0.17677669, %v2471_v28  ;;  %v1447_v33 = vsel %vm776_vm1, %v3594_v44, -inf  ;;  %v3601_v34 = vadd.f32 %v1417_v23, %v3512_v10 }
 0x316   : > { %v1401_v29 = vpop.f32.mrf.mxu0 }
 0x317   : > { %v1418_v55 = vmul.f32 0.17677669, %v1401_v29  ;;  %v1441_v35 = vsel %vm776_vm1, %v3601_v34, -inf  ;;  %v3611_v37 = vadd.f32 %v1420_v30, %v3524_v19 }
 0x318   : > { %1448 = vmax.xlane.f32.xlu1 %v1447_v33  ;;  %1439 = vmax.xlane.f32.xlu0 %v1438_v54 }
 0x319   : > { %v3604_v62 = vadd.f32 %v1418_v55, %v3519_v16  ;;  %v1450_v45 = vsel %vm776_vm1, %v3611_v37, -inf }
 0x31b   : > { %v1444_v36 = vsel %vm776_vm1, %v3604_v62, -inf }
 0x31c   : > { %1442 = vmax.xlane.f32.xlu1 %v1441_v35  ;;  %1445 = vmax.xlane.f32.xlu0 %v1444_v36 }
 0x320   : > { %1451 = vmax.xlane.f32.xlu0 %v1450_v45 }
 0x377   : > { %v1014_v46 = vpop.xlane.xlu0 %1013 }
 0x378   : > { %v1032_v8 = vsub.f32 %v3482_v40, %v1014_v46 }
 0x37a   : > { %v1042_v21 = vmul.f32 1.442695, %v1032_v8 }
 0x37b   : > { %v1008_v49 = vpop.xlane.xlu0 %1007 }
 0x37c   : > { %v1030_v23 = vsub.f32 %v3489_v48, %v1008_v49 }
 0x37d   : > { %v1011_v51 = vpop.xlane.xlu1 %1010 }
 0x37e   : > { %v1031_v16 = vsub.f32 %v3498_v59, %v1011_v51 }
 0x37f   : > { %v1017_v53 = vpop.xlane.xlu0 %1016 }
 0x380   : > { %v1033_v56 = vsub.f32 %v3501_v60, %v1017_v53  ;;  %v1040_v61 = vmul.f32 1.442695, %v1031_v16 }
 0x381   : > { %v1026_v58 = vpop.xlane.xlu1 %1025 }
 0x382   : > { %v1044_v1 = vmul.f32 1.442695, %v1033_v56 }
 0x384   : > { %2699 = vpow2.f32 %v1044_v1 }
 0x385   : > { %v1020_v19 = vpop.xlane.xlu1 %1019  ;;  %v1023_v6 = vpop.xlane.xlu0 %1022  ;;  %2701 = vpow2.f32 %v1040_v61 }
 0x386   : > { %v1035_v7 = vsub.f32 %v3522_v17, %v1023_v6  ;;  %v1034_v35 = vsub.f32 %v3517_v14, %v1020_v19 }
 0x388   : > { %v1048_v38 = vmul.f32 1.442695, %v1035_v7  ;;  %v1046_v46 = vmul.f32 1.442695, %v1034_v35 }
 0x389   : > { %v1029_v9 = vpop.xlane.xlu0 %1028  ;;  %v779_v11 = vpop.xlane.xlu1 %778 }
 0x38a   : > { %v1037_v12 = vsub.f32 %v3534_v24, %v1029_v9  ;;  %v801_v59 = vsub.f32 %v3527_v20, %v779_v11  ;;  %v1038_v24 = vmul.f32 1.442695, %v1030_v23  ;;  %v1036_v20 = vsub.f32 %v3508_v3, %v1026_v58 }
 0x38c   : > { %v1052_v15 = vmul.f32 1.442695, %v1037_v12  ;;  %v809_v60 = vmul.f32 1.442695, %v801_v59  ;;  %v1050_v33 = vmul.f32 1.442695, %v1036_v20 }
 0x38d   : > { %v785_v25 = vpop.xlane.xlu1 %784  ;;  %v782_v26 = vpop.xlane.xlu0 %781 }
 0x38e   : > { %2703 = vpow2.f32 %v1052_v15  ;;  %v802_v28 = vsub.f32 %v3544_v31, %v782_v26  ;;  %v803_v49 = vsub.f32 %v3537_v27, %v785_v25 }
 0x38f   : > { %2705 = vpow2.f32 %v809_v60 }
 0x390   : > { %2707 = vpow2.f32 %v1048_v38  ;;  %v811_v40 = vmul.f32 1.442695, %v802_v28  ;;  %v813_v1 = vmul.f32 1.442695, %v803_v49  ;;  %v2683_v49 = vld [vmem:[#allocation7 + $0x38] sm:$0xff]  }
 0x391   : > { %v3623_v17 = vpop.eup %2699  ;;  %2709 = vpow2.f32 %v1042_v21  ;;  %v788_v29 = vpop.xlane.xlu0 %787  ;;  %2424 = vmatprep.subr.bf16.mxu1 %v2683_v49 }
 0x392   : > { %v804_v54 = vsub.f32 %v3551_v39, %v788_v29  ;;  %v1063_v48 = vsel %vm776_vm1, %v3623_v17, 0.0  ;;  %v3629_v30 = vpop.eup %2701  ;;  %v791_v55 = vpop.xlane.xlu1 %790  ;;  %2711 = vpow2.f32 %v811_v40  ;;  %2425 = vmatpush3.bf16.msra.mxu1 %v2683_v49 }
 0x393   : > { %1064 = vadd.xlane.f32.xlu0 %v1063_v48  ;;  %2713 = vpow2.f32 %v1038_v24  ;;  %v1057_v3 = vsel %vm776_vm1, %v3629_v30, 0.0  ;;  %v805_v19 = vsub.f32 %v3554_v41, %v791_v55 }
 0x394   : > { %v815_v31 = vmul.f32 1.442695, %v804_v54 }
 0x395   : > { %v794_v36 = vpop.xlane.xlu0 %793  ;;  %v817_v12 = vmul.f32 1.442695, %v805_v19 }
 0x396   : > { %v806_v45 = vsub.f32 %v3564_v50, %v794_v36  ;;  %2715 = vpow2.f32 %v815_v31  ;;  %v797_v51 = vpop.xlane.xlu1 %796 }
 0x397   : > { %1058 = vadd.xlane.f32.xlu0 %v1057_v3  ;;  %2717 = vpow2.f32 %v1050_v33  ;;  %v807_v8 = vsub.f32 %v3557_v42, %v797_v51 }
 0x398   : > { %v819_v39 = vmul.f32 1.442695, %v806_v45 }
 0x399   : > { %v800_v16 = vpop.xlane.xlu0 %799  ;;  %v821_v60 = vmul.f32 1.442695, %v807_v8 }
 0x39a   : > { %v808_v53 = vsub.f32 %v3574_v4, %v800_v16  ;;  %2719 = vpow2.f32 %v819_v39  ;;  %v1437_v7 = vpop.xlane.xlu1 %1436 }
 0x39b   : > { %v3637_v56 = vpop.eup %2703  ;;  %2721 = vpow2.f32 %v1046_v46 }
 0x39c   : > { %v3639_v14 = vpop.eup %2705  ;;  %v823_v50 = vmul.f32 1.442695, %v808_v53  ;;  %v1075_v58 = vsel %vm776_vm1, %v3637_v56, 0.0 }
 0x39d   : > { %v3643_v61 = vpop.eup %2707  ;;  %v825_v27 = vsel %vm776_vm1, %v3639_v14, 0.0  ;;  %1076 = vadd.xlane.f32.xlu0 %v1075_v58  ;;  %v1434_v4 = vpop.xlane.xlu0 %1433 }
 0x39e   : > { %v3648_v6 = vpop.eup %2709  ;;  %826 = vadd.xlane.f32.xlu1 %v825_v27  ;;  %2723 = vpow2.f32 %v823_v50  ;;  %v1069_v9 = vsel %vm776_vm1, %v3643_v61, 0.0  ;;  %v1454_v41 = vsub.f32 %v3584_v18, %v1434_v4  ;;  %v1455_v18 = vsub.f32 %v3571_v2, %v1437_v7  ;;  %v1431_v26 = vpop.xlane.xlu1 %1430  ;;  %v2684_v50 = vld [vmem:[#allocation7 + $0x30] sm:$0xff]   ;;  %v2685_v4 = vld [vmem:[#allocation7 + $0x28] sm:$0xff]  }
 0x39f   : > { %v3653_v11 = vpop.eup %2711  ;;  %2725 = vpow2.f32 %v813_v1  ;;  %v1060_v59 = vsel %vm776_vm1, %v3648_v6, 0.0  ;;  %2426 = vmatprep.subr.bf16.mxu1 %v2684_v50 }
 0x3a0   : > { %v3658_v15 = vpop.eup %2713  ;;  %v828_v23 = vsel %vm776_vm1, %v3653_v11, 0.0  ;;  %2727 = vpow2.f32 %v817_v12  ;;  %v1463_v28 = vmul.f32 1.442695, %v1454_v41  ;;  %v1465_v2 = vmul.f32 1.442695, %v1455_v18  ;;  %2427 = vmatpush3.bf16.msra.mxu1 %v2684_v50  ;;  %v3725_v18 = vld [vmem:[#allocation7 + $0x18] sm:$0xff]  }
 0x3a1   : > { %1070 = vadd.xlane.f32.xlu0 %v1069_v9  ;;  %v1440_v38 = vpop.xlane.xlu0 %1439  ;;  %v1054_v40 = vsel %vm776_vm1, %v3658_v15, 0.0  ;;  %2428 = vmatprep.subr.bf16.mxu1 %v2685_v4 }
 0x3a2   : > { %1061 = vadd.xlane.f32.xlu1 %v1060_v59  ;;  %v1456_v42 = vsub.f32 %v3587_v22, %v1440_v38  ;;  %v1453_v22 = vsub.f32 %v3581_v13, %v1431_v26  ;;  %v2686_v59 = vld [vmem:[#allocation7 + $0x20] sm:$0xff]   ;;  %v1449_v26 = vpop.xlane.xlu1 %1448 }
 0x3a3   : > { %v3663_v25 = vpop.eup %2715 }
 0x3a4   : > { %v1467_v21 = vmul.f32 1.442695, %v1456_v42  ;;  %v3668_v20 = vpop.eup %2717  ;;  %v834_v29 = vsel %vm776_vm1, %v3663_v25, 0.0  ;;  %v1461_v13 = vmul.f32 1.442695, %v1453_v22  ;;  %2429 = vmatpush3.bf16.msra.mxu1 %v2685_v4 }
 0x3a5   : > { %829 = vadd.xlane.f32.xlu0 %v828_v23  ;;  %v1446_v24 = vpop.xlane.xlu0 %1445  ;;  %v1072_v55 = vsel %vm776_vm1, %v3668_v20, 0.0  ;;  %2430 = vmatprep.subr.bf16.mxu1 %v2686_v59 }
 0x3a6   : > { %1055 = vadd.xlane.f32.xlu1 %v1054_v40  ;;  %2729 = vpow2.f32 %v1467_v21  ;;  %v1458_v48 = vsub.f32 %v3604_v62, %v1446_v24  ;;  %v1443_v40 = vpop.xlane.xlu1 %1442 }
 0x3a7   : > { %2731 = vpow2.f32 %v821_v60  ;;  %v3673_v54 = vpop.eup %2719  ;;  %v1457_v22 = vsub.f32 %v3601_v34, %v1443_v40 }
 0x3a8   : > { %2733 = vpow2.f32 %v1463_v28  ;;  %v3678_v33 = vpop.eup %2721  ;;  %v840_v45 = vsel %vm776_vm1, %v3673_v54, 0.0  ;;  %v1471_v39 = vmul.f32 1.442695, %v1458_v48  ;;  %2431 = vmatpush3.bf16.msra.mxu1 %v2686_v59  ;;  %v1459_v28 = vsub.f32 %v3594_v44, %v1449_v26 }
 0x3a9   : > { %835 = vadd.xlane.f32.xlu0 %v834_v29  ;;  %v1452_v31 = vpop.xlane.xlu0 %1451  ;;  %2735 = vpow2.f32 %v1465_v2  ;;  %v1066_v62 = vsel %vm776_vm1, %v3678_v33, 0.0  ;;  %2440 = vmatprep.subr.bf16.mxu1 %v3725_v18  ;;  %v1469_v29 = vmul.f32 1.442695, %v1457_v22 }
 0x3aa   : > { %1073 = vadd.xlane.f32.xlu1 %v1072_v55  ;;  %v1460_v35 = vsub.f32 %v3611_v37, %v1452_v31  ;;  %v1473_v24 = vmul.f32 1.442695, %v1459_v28 }
 0x3ab   : > { %v3683_v3 = vpop.eup %2723 }
 0x3ac   : > { %v1475_v36 = vmul.f32 1.442695, %v1460_v35  ;;  %v3687_v46 = vpop.eup %2725  ;;  %v846_v37 = vsel %vm776_vm1, %v3683_v3, 0.0 }
 0x3ad   : > { %841 = vadd.xlane.f32.xlu0 %v840_v45  ;;  %v831_v51 = vsel %vm776_vm1, %v3687_v46, 0.0  ;;  %v3693_v16 = vpop.eup %2727 }
 0x3ae   : > { %2737 = vpow2.f32 %v1475_v36  ;;  %1067 = vadd.xlane.f32.xlu1 %v1066_v62  ;;  %v837_v1 = vsel %vm776_vm1, %v3693_v16, 0.0 }
 0x3af   : > { %2739 = vpow2.f32 %v1461_v13 }
 0x3b0   : > { %2741 = vpow2.f32 %v1471_v39 }
 0x3b1   : > { %847 = vadd.xlane.f32.xlu0 %v846_v37  ;;  %2743 = vpow2.f32 %v1473_v24 }
 0x3b2   : > { %832 = vadd.xlane.f32.xlu1 %v831_v51  ;;  %2745 = vpow2.f32 %v1469_v29 }
 0x3b3   : > { %v3695_v53 = vpop.eup %2729 }
 0x3b4   : > { %v3697_v58 = vpop.eup %2731  ;;  %v1486_v19 = vsel %vm776_vm1, %v3695_v53, 0.0 }
 0x3b5   : > { %v3703_v27 = vpop.eup %2733  ;;  %1487 = vadd.xlane.f32.xlu0 %v1486_v19  ;;  %v843_v7 = vsel %vm776_vm1, %v3697_v58, 0.0 }
 0x3b6   : > { %838 = vadd.xlane.f32.xlu1 %v837_v1  ;;  %v1480_v8 = vsel %vm776_vm1, %v3703_v27, 0.0  ;;  %v3709_v9 = vpop.eup %2735 }
 0x3b7   : > { %v1483_v42 = vsel %vm776_vm1, %v3709_v9, 0.0 }
 0x3b9   : > { %1481 = vadd.xlane.f32.xlu0 %v1480_v8 }
 0x3ba   : > { %844 = vadd.xlane.f32.xlu1 %v843_v7 }
 0x3bb   : > { %v3711_v12 = vpop.eup %2737 }
 0x3bc   : > { %v1498_v41 = vsel %vm776_vm1, %v3711_v12, 0.0  ;;  %v3715_v38 = vpop.eup %2739 }
 0x3bd   : > { %v3719_v60 = vpop.eup %2741  ;;  %1499 = vadd.xlane.f32.xlu0 %v1498_v41  ;;  %v1477_v21 = vsel %vm776_vm1, %v3715_v38, 0.0 }
 0x3be   : > { %1484 = vadd.xlane.f32.xlu1 %v1483_v42  ;;  %v1492_v23 = vsel %vm776_vm1, %v3719_v60, 0.0  ;;  %v3734_v2 = vpop.eup %2743 }
 0x3c1   : > { %1493 = vadd.xlane.f32.xlu0 %v1492_v23 }
 0x3c2   : > { %1478 = vadd.xlane.f32.xlu1 %v1477_v21  ;;  %v2688_v21 = vld [vmem:[#allocation7 + $0x10] sm:$0xff]  }
 0x3d3   : > { %1652 = vrot.lane.b32.xlu1 %v3411_v63, %s3110_s24  ;;  %v1495_v63 = vsel %vm776_vm1, %v3734_v2, 0.0 }
 0x3d7   : > { %1650 = vrot.lane.b32.xlu0 %v3413_v0, %s3110_s24  ;;  %v3738_v0 = vpop.eup %2745 }
 0x3db   : > { %1638 = vrot.lane.b32.xlu0 %v3391_v32, %s3110_s24  ;;  %v1489_v32 = vsel %vm776_vm1, %v3738_v0, 0.0 }
 0x3df   : > { %1642 = vrot.lane.b32.xlu0 %v3407_v57, %s3110_s24 }
 0x3f7   : > { %1496 = vadd.xlane.f32.xlu1 %v1495_v63 }
 0x3fb   : > { %1490 = vadd.xlane.f32.xlu1 %v1489_v32 }
 0x40c   : > { %1648 = vrot.lane.b32.xlu1 %v3395_v43, %s3110_s24 }
 0x410   : > { %1646 = vrot.lane.b32.xlu1 %v3399_v47, %s3110_s24 }
 0x414   : > { %1640 = vrot.lane.b32.xlu1 %v3403_v52, %s3110_s24 }
 0x418   : > { %1644 = vrot.lane.b32.xlu1 %v3434_v5, %s3110_s24  ;;  %s3022_s24 = sshll.u32 %s3113_s15, 4  ;;  %s3023_s24 = int_to_ptr.vmem [resolvable:$false] %s3022_s24 }
 0x419   : > { %s3024_s17 = scalar_lea.vmem %s3023_s24, 2048  ;;  %p3025_p4 = scmp.lt.s32.totalorder %s3895_s5, %s3023_s24 }
 0x41a   : > { %p3026_p13 = scmp.lt.s32.totalorder %s3024_s17, %s3018_s28 }
 0x41c   : > { %v1065_v57 = vpop.xlane.xlu0 %1064  ;;  %p3027_p1 = por %p3026_p13, %p3025_p4 }
 0x41e   : > { %p3028_p3 = pnand %p3027_p1, %p3021_p9 }
 0x420   : > { %v1059_v44 = vpop.xlane.xlu0 %1058 }
 0x426   : > { %v1077_v34 = vpop.xlane.xlu0 %1076 }
 0x427   : > { %v827_v48 = vpop.xlane.xlu1 %826 }
 0x42a   : > { %v1071_v55 = vpop.xlane.xlu0 %1070 }
 0x42b   : > { %v1062_v31 = vpop.xlane.xlu1 %1061 }
 0x42c   : > { %2747 = vrcp.f32 %v1062_v31 }
 0x42d   : > { %2749 = vrcp.f32 %v1059_v44 }
 0x42e   : > { %v830_v35 = vpop.xlane.xlu0 %829  ;;  %2751 = vrcp.f32 %v1065_v57 }
 0x42f   : > { %v1056_v13 = vpop.xlane.xlu1 %1055 }
 0x430   : > { %2753 = vrcp.f32 %v1056_v13 }
 0x431   : > { %2755 = vrcp.f32 %v1077_v34  ;;  %v2690_v34 = vld [vmem:[#allocation7] sm:$0xff]  }
 0x432   : > { %v836_v36 = vpop.xlane.xlu0 %835  ;;  %2757 = vrcp.f32 %v1071_v55  ;;  %v2691_v55 = vld [vmem:[#allocation7 + $0x58] sm:$0xff]  }
 0x433   : > { %v1074_v43 = vpop.xlane.xlu1 %1073 }
 0x434   : > { %2759 = vrcp.f32 %v1074_v43  ;;  %v2692_v43 = vld [vmem:[#allocation7 + $0x50] sm:$0xff]  }
 0x435   : > { %2761 = vrcp.f32 %v830_v35 }
 0x436   : > { %v842_v47 = vpop.xlane.xlu0 %841  ;;  %2763 = vrcp.f32 %v827_v48 }
 0x437   : > { %v1068_v52 = vpop.xlane.xlu1 %1067 }
 0x438   : > { %2765 = vrcp.f32 %v1068_v52 }
 0x439   : > { %v2748_v5 = vpop.eup %2747 }
 0x43a   : > { %v2750_v45 = vpop.eup %2749  ;;  %v848_v62 = vpop.xlane.xlu0 %847  ;;  %v1083_v51 = vmul.f32 %v2748_v5, %v3648_v6 }
 0x43b   : > { %v833_v39 = vpop.xlane.xlu1 %832  ;;  %v2752_v37 = vpop.eup %2751  ;;  %v1081_v1 = vmul.f32 %v2750_v45, %v3629_v30  ;;  %v2689_v30 = vld [vmem:[#allocation7 + $0x8] sm:$0xff]  }
 0x43c   : > { %2767 = vrcp.f32 %v833_v39  ;;  %v1085_v19 = vmul.f32 %v2752_v37, %v3623_v17  ;;  %v2694_v37 = vld [vmem:[#allocation7 + $0x40] sm:$0xff]  }
 0x43d   : > { %v2754_v49 = vpop.eup %2753  ;;  %2769 = vrcp.f32 %v836_v36 }
 0x43e   : > { %v1079_v50 = vmul.f32 %v2754_v49, %v3658_v15  ;;  %2771 = vrcp.f32 %v842_v47  ;;  %v2756_v7 = vpop.eup %2755  ;;  %v1095_v59 = vpack.c.bf16 %v1085_v19, %v1083_v51  ;;  %v1488_v42 = vpop.xlane.xlu0 %1487 }
 0x43f   : > { %v839_v4 = vpop.xlane.xlu1 %838  ;;  %v2758_v41 = vpop.eup %2757  ;;  %v1093_v32 = vmul.f32 %v2756_v7, %v3637_v56 }
 0x440   : > { %2773 = vrcp.f32 %v839_v4  ;;  %v1094_v8 = vpack.c.bf16 %v1081_v1, %v1079_v50  ;;  %v1089_v24 = vmul.f32 %v2758_v41, %v3643_v61 }
 0x441   : > { %v2760_v23 = vpop.eup %2759 }
 0x442   : > { %2432 = vmatprep.mubr.msk.bf16.mxu1 %vm776_vm1, %v1094_v8  ;;  %v2762_v6 = vpop.eup %2761  ;;  %v1091_v28 = vmul.f32 %v2760_v23, %v3668_v20  ;;  %v1482_v29 = vpop.xlane.xlu0 %1481 }
 0x443   : > { %v845_v26 = vpop.xlane.xlu1 %844  ;;  %2433 = vmatmul.mubr.msk.bf16.vlgmr.msra.gmra.mxu1 %vm776_vm1, %v1095_v59  ;;  %v2764_v15 = vpop.eup %2763  ;;  %v852_v22 = vmul.f32 %v2762_v6, %v3653_v11 }
 0x444   : > { %2441 = vmatpush3.bf16.msra.mxu1 %v3725_v18  ;;  %2775 = vrcp.f32 %v845_v26  ;;  %v850_v18 = vmul.f32 %v2764_v15, %v3639_v14  ;;  %v1097_v44 = vpack.c.bf16 %v1093_v32, %v1091_v28 }
 0x445   : > { %v2766_v17 = vpop.eup %2765  ;;  %2442 = vmatprep.subr.bf16.mxu1 %v2688_v21  ;;  %2777 = vrcp.f32 %v848_v62 }
 0x446   : > { %v1087_v40 = vmul.f32 %v2766_v17, %v3678_v33  ;;  %2779 = vrcp.f32 %v1482_v29  ;;  %v865_v20 = vpack.c.bf16 %v852_v22, %v850_v18  ;;  %v1500_v39 = vpop.xlane.xlu0 %1499 }
 0x447   : > { %v1485_v63 = vpop.xlane.xlu1 %1484 }
 0x448   : > { %2443 = vmatpush3.bf16.msra.mxu1 %v2688_v21  ;;  %v1096_v57 = vpack.c.bf16 %v1089_v24, %v1087_v40 }
 0x449   : > { %2444 = vmatprep.subr.bf16.mxu1 %v2689_v30  ;;  %v2768_v48 = vpop.eup %2767 }
 0x44a   : > { %2436 = vmatprep.mubr.msk.bf16.mxu1 %vm776_vm1, %v1096_v57  ;;  %v2770_v61 = vpop.eup %2769  ;;  %v854_v14 = vmul.f32 %v2768_v48, %v3687_v46  ;;  %v2693_v46 = vld [vmem:[#allocation7 + $0x48] sm:$0xff]  }
 0x44b   : > { %v1479_v33 = vpop.xlane.xlu1 %1478  ;;  %2437 = vmatmul.mubr.msk.bf16.gmra.mxu1 %vm776_vm1, %v1097_v44  ;;  %v2772_v11 = vpop.eup %2771  ;;  %v856_v35 = vmul.f32 %v2770_v61, %v3663_v25 }
 0x44c   : > { %2781 = vrcp.f32 %v1479_v33  ;;  %2445 = vmatpush3.bf16.msra.mxu1 %v2689_v30  ;;  %2448 = vmatprep.mubr.msk.bf16.mxu1 %vm776_vm1, %v865_v20  ;;  %v860_v13 = vmul.f32 %v2772_v11, %v3673_v54 }
 0x44d   : > { %v2774_v56 = vpop.eup %2773  ;;  %2783 = vrcp.f32 %v1485_v63  ;;  %2446 = vmatprep.subr.bf16.mxu1 %v2690_v34  ;;  %v866_v36 = vpack.c.bf16 %v856_v35, %v854_v14 }
 0x44e   : > { %v858_v31 = vmul.f32 %v2774_v56, %v3693_v16  ;;  %2785 = vrcp.f32 %v1488_v42 }
 0x44f   : > { %v1653_v7 = vpop.permute.xlu1 %1652 }
 0x450   : > { %2447 = vmatpush3.bf16.msra.mxu1 %v2690_v34  ;;  %v867_v52 = vpack.c.bf16 %v860_v13, %v858_v31 }
 0x451   : > { %2472 = vmatprep.subr.bf16.mxu1 %v2691_v55  ;;  %v2776_v47 = vpop.eup %2775 }
 0x452   : > { %v2778_v5 = vpop.eup %2777  ;;  %v862_v16 = vmul.f32 %v2776_v47, %v3697_v58 }
 0x453   : > { %2449 = vmatmul.mubr.msk.bf16.vlgmr.msra.gmra.mxu1 %vm776_vm1, %v866_v36  ;;  %v2780_v25 = vpop.eup %2779  ;;  %v864_v45 = vmul.f32 %v2778_v5, %v3683_v3  ;;  %v1494_v3 = vpop.xlane.xlu0 %1493 }
 0x454   : > { %2473 = vmatpush3.bf16.msra.mxu1 %v2691_v55  ;;  %2452 = vmatprep.mubr.msk.bf16.mxu1 %vm776_vm1, %v867_v52  ;;  %v1504_v50 = vmul.f32 %v2780_v25, %v3703_v27  ;;  %v1676_v27 = vsel %vm670_vm0, %v1653_v7, 0 }
 0x455   : > { %2474 = vmatprep.subr.bf16.mxu1 %v2692_v43  ;;  %v868_v62 = vpack.c.bf16 %v864_v45, %v862_v16 }
 0x458   : > { %2475 = vmatpush3.bf16.msra.mxu1 %v2692_v43 }
 0x459   : > { %v2782_v54 = vpop.eup %2781  ;;  %2476 = vmatprep.subr.bf16.mxu1 %v2693_v46 }
 0x45a   : > { %v2784_v49 = vpop.eup %2783  ;;  %v1502_v51 = vmul.f32 %v2782_v54, %v3715_v38  ;;  %v1651_v38 = vpop.permute.xlu0 %1650 }
 0x45b   : > { %2453 = vmatmul.mubr.msk.bf16.gmra.mxu1 %vm776_vm1, %v868_v62  ;;  %v2786_v1 = vpop.eup %2785  ;;  %v1506_v58 = vmul.f32 %v2784_v49, %v3709_v9  ;;  %v1673_v9 = vsel %vm670_vm0, %v1651_v38, 0 }
 0x45c   : > { %2477 = vmatpush3.bf16.msra.mxu1 %v2693_v46  ;;  %v1517_v19 = vpack.c.bf16 %v1504_v50, %v1502_v51  ;;  %v1508_v4 = vmul.f32 %v2786_v1, %v3695_v53 }
 0x45d   : > { %2478 = vmatprep.subr.bf16.mxu1 %v2694_v37 }
 0x45e   : > { %2480 = vmatprep.mubr.msk.bf16.mxu1 %vm776_vm1, %v1517_v19  ;;  %v1518_v8 = vpack.c.bf16 %v1508_v4, %v1506_v58  ;;  %v1639_v63 = vpop.permute.xlu0 %1638 }
 0x460   : > { %2479 = vmatpush3.bf16.msra.mxu1 %v2694_v37 }
 0x461   : > { %2532 = vmatprep.subr.msk.bf16.mxu1 %vm670_vm0, %v1653_v7 }
 0x462   : > { %v1643_v57 = vpop.permute.xlu0 %1642 }
 0x463   : > { %2481 = vmatmul.mubr.msk.bf16.vlgmr.msra.gmra.mxu1 %vm776_vm1, %v1518_v8 }
 0x464   : > { %2489 = vmatpush3.bf16.xpose.msra.mxu1 %v1676_v27 }
 0x465   : > { %2533 = vmatprep.subr.msk.bf16.mxu1 %vm670_vm0, %v1651_v38 }
 0x46c   : > { %2491 = vmatpush3.bf16.xpose.msra.mxu1 %v1673_v9 }
 0x480   : > { %v1497_v41 = vpop.xlane.xlu1 %1496 }
 0x481   : > { %2787 = vrcp.f32 %v1497_v41 }
 0x482   : > { %2789 = vrcp.f32 %v1494_v3 }
 0x483   : > { %2791 = vrcp.f32 %v1500_v39 }
 0x484   : > { %v1491_v53 = vpop.xlane.xlu1 %1490 }
 0x485   : > { %2793 = vrcp.f32 %v1491_v53 }
 0x488   : > { %v1649_v59 = vpop.permute.xlu1 %1648 }
 0x489   : > { %v1670_v42 = vsel %vm670_vm0, %v1649_v59, 0  ;;  %2534 = vmatprep.subr.msk.bf16.mxu1 %vm670_vm0, %v1649_v59  ;;  %v2827_v59 = vld [vmem:[#allocation8] sm:$0xff] }
 0x48a   : > { %2493 = vmatpush3.bf16.xpose.msra.mxu1 %v1670_v42 }
 0x48c   : > { %v1647_v21 = vpop.permute.xlu1 %1646 }
 0x48d   : > { %2535 = vmatprep.subr.msk.bf16.mxu1 %vm670_vm0, %v1647_v21  ;;  %v1667_v15 = vsel %vm670_vm0, %v1647_v21, 0 }
 0x48e   : > { %v2788_v23 = vpop.eup %2787 }
 0x48f   : > { %v2790_v6 = vpop.eup %2789  ;;  %v1514_v30 = vmul.f32 %v2788_v23, %v3734_v2 }
 0x490   : > { %v2792_v26 = vpop.eup %2791  ;;  %v1512_v40 = vmul.f32 %v2790_v6, %v3719_v60  ;;  %v1641_v32 = vpop.permute.xlu1 %1640 }
 0x491   : > { %v1516_v24 = vmul.f32 %v2792_v26, %v3711_v12 }
 0x492   : > { %v2794_v17 = vpop.eup %2793  ;;  %2495 = vmatpush3.bf16.xpose.msra.mxu1 %v1667_v15  ;;  %v2828_v15 = vld [vmem:[#allocation8 + $0x10] sm:$0xff] }
 0x493   : > { %v1510_v28 = vmul.f32 %v2794_v17, %v3738_v0  ;;  %v1520_v29 = vpack.c.bf16 %v1516_v24, %v1514_v30 }
 0x494   : > { %v1645_v2 = vpop.permute.xlu1 %1644 }
 0x495   : > { %v1519_v22 = vpack.c.bf16 %v1512_v40, %v1510_v28  ;;  %v2829_v28 = vld [vmem:[#allocation8 + $0x8] sm:$0xff] }
 0x497   : > { %2484 = vmatprep.mubr.msk.bf16.mxu1 %vm776_vm1, %v1519_v22  ;;  %v2830_v22 = vld [vmem:[#allocation8 + $0x18] sm:$0xff] }
 0x498   : > { %2485 = vmatmul.mubr.msk.bf16.gmra.mxu1 %vm776_vm1, %v1520_v29 }
 0x499   : > { %2496 = vmatprep.mubr.msk.bf16.mxu1 %vm670_vm0, %v1639_v63 }
 0x4a0   : > { %2497 = vmatmul.mubr.msk.bf16.vlgmr.msra.gmra.mxu1 %vm670_vm0, %v1641_v32 }
 0x4a1   : > { %2500 = vmatprep.mubr.msk.bf16.mxu1 %vm670_vm0, %v1643_v57 }
 0x4a8   : > { %2501 = vmatmul.mubr.msk.bf16.gmra.mxu1 %vm670_vm0, %v1645_v2 }
 0x503   : > { %v2434_v60 = vpop.f32.mrf.mxu1 }
 0x505   : > { %v1176_v12 = vpop.f32.mrf.mxu1 }
 0x507   : > { %v2435_v0 = vpop.f32.mrf.mxu1 }
 0x509   : > { %v1179_v18 = vpop.f32.mrf.mxu1 }
 0x50b   : > { %v2438_v44 = vpop.f32.mrf.mxu1 }
 0x50d   : > { %v1192_v34 = vpop.f32.mrf.mxu1 }
 0x50f   : > { %v2439_v48 = vpop.f32.mrf.mxu1 }
 0x511   : > { %v1195_v20 = vpop.f32.mrf.mxu1 }
 0x513   : > { %v2450_v61 = vpop.f32.mrf.mxu1 }
 0x514   : > { %v1286_v33 = vadd.f32 %v2450_v61, %v2434_v60 }
 0x515   : > { %v1277_v11 = vpop.f32.mrf.mxu1 }
 0x516   : > { %v1278_v56 = vadd.f32 %v1277_v11, %v1176_v12 }
 0x517   : > { %v2451_v14 = vpop.f32.mrf.mxu1 }
 0x518   : > { %v1289_v55 = vadd.f32 %v2451_v14, %v2435_v0 }
 0x519   : > { %v1280_v31 = vpop.f32.mrf.mxu1 }
 0x51a   : > { %v1281_v35 = vadd.f32 %v1280_v31, %v1179_v18 }
 0x51b   : > { %v2454_v13 = vpop.f32.mrf.mxu1 }
 0x51c   : > { %v1302_v36 = vadd.f32 %v2454_v13, %v2438_v44 }
 0x51d   : > { %v1293_v43 = vpop.f32.mrf.mxu1 }
 0x51e   : > { %v1294_v47 = vadd.f32 %v1293_v43, %v1192_v34 }
 0x51f   : > { %v2455_v52 = vpop.f32.mrf.mxu1 }
 0x520   : > { %v1305_v5 = vadd.f32 %v2455_v52, %v2439_v48 }
 0x521   : > { %v1296_v46 = vpop.f32.mrf.mxu1 }
 0x522   : > { %v1297_v16 = vadd.f32 %v1296_v46, %v1195_v20  ;;  %v2831_v20 = vld [vmem:[#allocation8 + $0x30] sm:$0xff] }
 0x523   : > { %v2482_v25 = vpop.f32.mrf.mxu1 }
 0x524   : > { %v3795_v45 = vadd.f32 %v2482_v25, %v1286_v33  ;;  %v2832_v33 = vld [vmem:[#allocation8 + $0x28] sm:$0xff] }
 0x525   : > { %v1599_v39 = vpop.f32.mrf.mxu1 }
 0x526   : > { %v3797_v54 = vadd.f32 %v1599_v39, %v1278_v56 }
 0x527   : > { %v2483_v62 = vpop.f32.mrf.mxu1 }
 0x528   : > { %v3799_v37 = vadd.f32 %v2483_v62, %v1289_v55  ;;  %v2833_v55 = vld [vmem:[#allocation8 + $0x38] sm:$0xff] }
 0x529   : > { %v1602_v49 = vpop.f32.mrf.mxu1 }
 0x52a   : > { %v3801_v51 = vadd.f32 %v1602_v49, %v1281_v35 }
 0x558   : > { %v2486_v50 = vpop.f32.mrf.mxu1 }
 0x559   : > { %v3803_v1 = vadd.f32 %v2486_v50, %v1302_v36 }
 0x55a   : > { %v1615_v19 = vpop.f32.mrf.mxu1 }
 0x55b   : > { %v3805_v58 = vadd.f32 %v1615_v19, %v1294_v47 }
 0x55c   : > { %v2487_v3 = vpop.f32.mrf.mxu1 }
 0x55d   : > { %v3807_v4 = vadd.f32 %v2487_v3, %v1305_v5 }
 0x55e   : > { %v1618_v7 = vpop.f32.mrf.mxu1 }
 0x55f   : > { %v3809_v8 = vadd.f32 %v1618_v7, %v1297_v16 }
 0x560   : > { %v2498_v27 = vpop.f32.mrf.mxu1 }
 0x561   : > { %v1745_v9 = vmul.f32 0.17677669, %v2498_v27 }
 0x562   : > { %v1712_v38 = vpop.f32.mrf.mxu1 }
 0x563   : > { %v1743_v41 = vmul.f32 0.17677669, %v1712_v38  ;;  %v1753_v17 = vadd.f32 %v2828_v15, %v1745_v9 }
 0x564   : > { %v2499_v53 = vpop.f32.mrf.mxu1 }
 0x565   : > { %v1751_v42 = vadd.f32 %v2827_v59, %v1743_v41  ;;  %v1746_v21 = vmul.f32 0.17677669, %v2499_v53  ;;  %v1765_v57 = vsel %vm776_vm1, %v1753_v17, -inf }
 0x566   : > { %v1715_v23 = vpop.f32.mrf.mxu1 }
 0x567   : > { %v1744_v6 = vmul.f32 0.17677669, %v1715_v23  ;;  %v1759_v26 = vsel %vm776_vm1, %v1751_v42, -inf  ;;  %v1754_v29 = vadd.f32 %v2830_v22, %v1746_v21 }
 0x568   : > { %1760 = vmax.xlane.f32.xlu0 %v1759_v26  ;;  %v2502_v30 = vpop.f32.mrf.mxu1 }
 0x569   : > { %v1752_v40 = vadd.f32 %v2829_v28, %v1744_v6  ;;  %v1749_v63 = vmul.f32 0.17677669, %v2502_v30  ;;  %v1768_v18 = vsel %vm776_vm1, %v1754_v29, -inf }
 0x56a   : > { %v1728_v24 = vpop.f32.mrf.mxu1 }
 0x56b   : > { %v1747_v32 = vmul.f32 0.17677669, %v1728_v24  ;;  %v1762_v2 = vsel %vm776_vm1, %v1752_v40, -inf  ;;  %v1757_v61 = vadd.f32 %v2831_v20, %v1749_v63 }
 0x56c   : > { %1766 = vmax.xlane.f32.xlu0 %v1765_v57  ;;  %1763 = vmax.xlane.f32.xlu1 %v1762_v2  ;;  %v2503_v60 = vpop.f32.mrf.mxu1 }
 0x56d   : > { %v1755_v12 = vadd.f32 %v1747_v32, %v3512_v10  ;;  %v1750_v44 = vmul.f32 0.17677669, %v2503_v60  ;;  %v1777_v56 = vsel %vm776_vm1, %v1757_v61, -inf  ;;  %v2695_v60 = vld [vmem:[#allocation7 + $0x78] sm:$0xff]  }
 0x56e   : > { %v1731_v0 = vpop.f32.mrf.mxu1  ;;  %2504 = vmatprep.subr.bf16.mxu0 %v2695_v60 }
 0x56f   : > { %v1748_v34 = vmul.f32 0.17677669, %v1731_v0  ;;  %v1771_v48 = vsel %vm776_vm1, %v1755_v12, -inf  ;;  %v1758_v31 = vadd.f32 %v2833_v55, %v1750_v44  ;;  %2505 = vmatpush3.bf16.msra.mxu0 %v2695_v60  ;;  %v2697_v0 = vld [vmem:[#allocation7 + $0x68] sm:$0xff]   ;;  %v1983_v60 = vld [vmem:[#allocation10] sm:$0xff] }
 0x570   : > { %1769 = vmax.xlane.f32.xlu0 %v1768_v18  ;;  %1772 = vmax.xlane.f32.xlu1 %v1771_v48  ;;  %v2698_v18 = vld [vmem:[#allocation7 + $0x60] sm:$0xff]  }
 0x571   : > { %v1756_v11 = vadd.f32 %v2832_v33, %v1748_v34  ;;  %v1780_v10 = vsel %vm776_vm1, %v1758_v31, -inf }
 0x573   : > { %v1774_v14 = vsel %vm776_vm1, %v1756_v11, -inf }
 0x574   : > { %1778 = vmax.xlane.f32.xlu1 %v1777_v56  ;;  %1775 = vmax.xlane.f32.xlu0 %v1774_v14 }
 0x578   : > { %1781 = vmax.xlane.f32.xlu0 %v1780_v10 }
 0x5f1   : > { %v1761_v35 = vpop.xlane.xlu0 %1760 }
 0x5f2   : > { %v1783_v13 = vsub.f32 %v1751_v42, %v1761_v35 }
 0x5f4   : > { %v1791_v36 = vmul.f32 1.442695, %v1783_v13 }
 0x5f5   : > { %v1764_v43 = vpop.xlane.xlu1 %1763  ;;  %v1767_v47 = vpop.xlane.xlu0 %1766 }
 0x5f6   : > { %2795 = vpow2.f32 %v1791_v36  ;;  %v1784_v52 = vsub.f32 %v1752_v40, %v1764_v43  ;;  %v1785_v5 = vsub.f32 %v1753_v17, %v1767_v47 }
 0x5f8   : > { %v1793_v46 = vmul.f32 1.442695, %v1784_v52  ;;  %v1795_v16 = vmul.f32 1.442695, %v1785_v5 }
 0x5f9   : > { %v1773_v25 = vpop.xlane.xlu1 %1772  ;;  %v1770_v39 = vpop.xlane.xlu0 %1769 }
 0x5fa   : > { %2797 = vpow2.f32 %v1793_v46  ;;  %v1787_v62 = vsub.f32 %v1755_v12, %v1773_v25  ;;  %v1786_v49 = vsub.f32 %v1754_v29, %v1770_v39  ;;  %v2696_v12 = vld [vmem:[#allocation7 + $0x70] sm:$0xff]  }
 0x5fb   : > { %2799 = vpow2.f32 %v1795_v16  ;;  %2506 = vmatprep.subr.bf16.mxu0 %v2696_v12 }
 0x5fc   : > { %v1799_v50 = vmul.f32 1.442695, %v1787_v62  ;;  %v1797_v19 = vmul.f32 1.442695, %v1786_v49  ;;  %2507 = vmatpush3.bf16.msra.mxu0 %v2696_v12  ;;  %v2015_v12 = vld [vmem:[#allocation11] sm:$0xff] }
 0x5fd   : > { %v1779_v3 = vpop.xlane.xlu1 %1778  ;;  %v1776_v7 = vpop.xlane.xlu0 %1775  ;;  %2508 = vmatprep.subr.bf16.mxu0 %v2697_v0 }
 0x5fe   : > { %2801 = vpow2.f32 %v1799_v50  ;;  %v1789_v27 = vsub.f32 %v1757_v61, %v1779_v3  ;;  %v1788_v38 = vsub.f32 %v1756_v11, %v1776_v7 }
 0x5ff   : > { %2803 = vpow2.f32 %v1797_v19 }
 0x600   : > { %v1803_v9 = vmul.f32 1.442695, %v1789_v27  ;;  %v1801_v41 = vmul.f32 1.442695, %v1788_v38  ;;  %2509 = vmatpush3.bf16.msra.mxu0 %v2697_v0  ;;  %v2320_v27 = vld [vmem:[%s3949_s4] ss:$0 sm:$0xff] }
 0x601   : > { %v1782_v53 = vpop.xlane.xlu0 %1781  ;;  %2510 = vmatprep.subr.bf16.mxu0 %v2698_v18 }
 0x602   : > { %2805 = vpow2.f32 %v1803_v9  ;;  %v1790_v59 = vsub.f32 %v1758_v31, %v1782_v53 }
 0x603   : > { %v2796_v42 = vpop.eup %2795  ;;  %2807 = vpow2.f32 %v1801_v41 }
 0x604   : > { %v1805_v21 = vmul.f32 1.442695, %v1790_v59  ;;  %v1807_v23 = vsel %vm776_vm1, %v2796_v42, 0.0  ;;  %2511 = vmatpush3.bf16.msra.mxu0 %v2698_v18 }
 0x605   : > { %1808 = vadd.xlane.f32.xlu1 %v1807_v23 }
 0x606   : > { %2809 = vpow2.f32 %v1805_v21 }
 0x607   : > { %v2798_v6 = vpop.eup %2797 }
 0x608   : > { %v2800_v26 = vpop.eup %2799  ;;  %v1810_v15 = vsel %vm776_vm1, %v2798_v6, 0.0 }
 0x609   : > { %1811 = vadd.xlane.f32.xlu0 %v1810_v15  ;;  %v1813_v17 = vsel %vm776_vm1, %v2800_v26, 0.0 }
 0x60a   : > { %1814 = vadd.xlane.f32.xlu1 %v1813_v17 }
 0x60b   : > { %v2802_v30 = vpop.eup %2801 }
 0x60c   : > { %v2804_v28 = vpop.eup %2803  ;;  %v1819_v40 = vsel %vm776_vm1, %v2802_v30, 0.0 }
 0x60d   : > { %v1816_v24 = vsel %vm776_vm1, %v2804_v28, 0.0 }
 0x60e   : > { %1820 = vadd.xlane.f32.xlu1 %v1819_v40  ;;  %1817 = vadd.xlane.f32.xlu0 %v1816_v24 }
 0x60f   : > { %v2806_v22 = vpop.eup %2805 }
 0x610   : > { %v2808_v29 = vpop.eup %2807  ;;  %v1825_v63 = vsel %vm776_vm1, %v2806_v22, 0.0 }
 0x611   : > { %v1822_v32 = vsel %vm776_vm1, %v2808_v29, 0.0 }
 0x612   : > { %1826 = vadd.xlane.f32.xlu1 %v1825_v63  ;;  %1823 = vadd.xlane.f32.xlu0 %v1822_v32  ;;  %v2057_v63 = vld [vmem:[#allocation13 + $0x10] sm:$0xff] }
 0x613   : > { %v2810_v57 = vpop.eup %2809 }
 0x614   : > { %v1828_v2 = vsel %vm776_vm1, %v2810_v57, 0.0 }
 0x616   : > { %1829 = vadd.xlane.f32.xlu0 %v1828_v2 }
 0x68e   : > { %v1809_v44 = vpop.xlane.xlu1 %1808 }
 0x68f   : > { %2811 = vrcp.f32 %v1809_v44 }
 0x692   : > { %v1812_v34 = vpop.xlane.xlu0 %1811 }
 0x693   : > { %v1815_v48 = vpop.xlane.xlu1 %1814  ;;  %2813 = vrcp.f32 %v1812_v34  ;;  %v2055_v34 = vld [vmem:[#allocation13] sm:$0xff] }
 0x694   : > { %2815 = vrcp.f32 %v1815_v48 }
 0x697   : > { %v1821_v20 = vpop.xlane.xlu1 %1820  ;;  %v1818_v61 = vpop.xlane.xlu0 %1817 }
 0x698   : > { %2817 = vrcp.f32 %v1818_v61 }
 0x699   : > { %2819 = vrcp.f32 %v1821_v20 }
 0x69b   : > { %v1827_v33 = vpop.xlane.xlu1 %1826  ;;  %v1824_v11 = vpop.xlane.xlu0 %1823 }
 0x69c   : > { %2821 = vrcp.f32 %v1824_v11  ;;  %v2812_v56 = vpop.eup %2811  ;;  %v2018_v11 = vld [vmem:[#allocation11 + $0x18] sm:$0xff] }
 0x69d   : > { %2823 = vrcp.f32 %v1827_v33  ;;  %v1832_v31 = vmul.f32 %v2812_v56, %v2796_v42 }
 0x69f   : > { %v1830_v14 = vpop.xlane.xlu0 %1829 }
 0x6a0   : > { %v2814_v55 = vpop.eup %2813  ;;  %2825 = vrcp.f32 %v1830_v14 }
 0x6a1   : > { %v1834_v10 = vmul.f32 %v2814_v55, %v2798_v6  ;;  %v2816_v13 = vpop.eup %2815  ;;  %v1986_v55 = vld [vmem:[#allocation10 + $0x18] sm:$0xff] }
 0x6a2   : > { %v1836_v43 = vmul.f32 %v2816_v13, %v2800_v26 }
 0x6a3   : > { %v1847_v35 = vpack.c.bf16 %v1834_v10, %v1832_v31 }
 0x6a5   : > { %2512 = vmatprep.mubr.msk.bf16.mxu0 %vm776_vm1, %v1847_v35  ;;  %v2818_v36 = vpop.eup %2817 }
 0x6a6   : > { %v1838_v47 = vmul.f32 %v2818_v36, %v2804_v28  ;;  %v2820_v52 = vpop.eup %2819  ;;  %v2016_v36 = vld [vmem:[#allocation11 + $0x8] sm:$0xff] }
 0x6a7   : > { %v1840_v25 = vmul.f32 %v2820_v52, %v2802_v30  ;;  %v1984_v52 = vld [vmem:[#allocation10 + $0x8] sm:$0xff] }
 0x6a8   : > { %v1848_v5 = vpack.c.bf16 %v1838_v47, %v1836_v43  ;;  %v2058_v43 = vld [vmem:[#allocation13 + $0x18] sm:$0xff] }
 0x6a9   : > { %v2822_v46 = vpop.eup %2821 }
 0x6aa   : > { %v2824_v16 = vpop.eup %2823  ;;  %2513 = vmatmul.mubr.msk.bf16.vlgmr.msra.gmra.mxu0 %vm776_vm1, %v1848_v5  ;;  %v1842_v39 = vmul.f32 %v2822_v46, %v2808_v29 }
 0x6ab   : > { %v1844_v50 = vmul.f32 %v2824_v16, %v2806_v22 }
 0x6ac   : > { %v1849_v49 = vpack.c.bf16 %v1842_v39, %v1840_v25 }
 0x6ad   : > { %v2826_v62 = vpop.eup %2825 }
 0x6ae   : > { %v1846_v19 = vmul.f32 %v2826_v62, %v2810_v57  ;;  %2516 = vmatprep.mubr.msk.bf16.mxu0 %vm776_vm1, %v1849_v49  ;;  %v2056_v62 = vld [vmem:[#allocation13 + $0x8] sm:$0xff]  ;;  %v2019_v49 = vld [vmem:[#allocation11 + $0x20] sm:$0xff] }
 0x6b0   : > { %v1850_v3 = vpack.c.bf16 %v1846_v19, %v1844_v50 }
 0x6b2   : > { %2517 = vmatmul.mubr.msk.bf16.gmra.mxu0 %vm776_vm1, %v1850_v3 }
 0x76a   : > { %v2514_v7 = vpop.f32.mrf.mxu0 }
 0x76b   : > { %v1962_v38 = vadd.f32 %v2514_v7, %v3795_v45  ;;  %v1987_v7 = vld [vmem:[#allocation10 + $0x20] sm:$0xff] }
 0x76c   : > { %v1929_v9 = vpop.f32.mrf.mxu0 }
 0x76d   : > { %v1977_v41 = vadd.f32 %v2320_v27, %v1962_v38  ;;  %v1960_v53 = vadd.f32 %v1929_v9, %v3797_v54 }
 0x76e   : > { %v2515_v59 = vpop.f32.mrf.mxu0 }
 0x76f   : > { %2043 = vrot.lane.b32.xlu0 %v1977_v41, %s3111_s25  ;;  %2003 = vrot.lane.b32.xlu1 %v1977_v41, %s3112_s29  ;;  %v1975_v21 = vadd.f32 %v2320_v27, %v1960_v53  ;;  %v1963_v23 = vadd.f32 %v2515_v59, %v3799_v37  ;;  %v2021_v53 = vld [vmem:[#allocation11 + $0x30] sm:$0xff]  ;;  %v2059_v59 = vld [vmem:[#allocation13 + $0x20] sm:$0xff] }
 0x770   : > { %v1932_v42 = vpop.f32.mrf.mxu0 }
 0x771   : > { %v1961_v6 = vadd.f32 %v1932_v42, %v3801_v51  ;;  %v1978_v45 = vadd.f32 %v2320_v27, %v1963_v23  ;;  %v1991_v61 = vmul.f32 %v1983_v60, %v1975_v21  ;;  %v1989_v23 = vld [vmem:[#allocation10 + $0x30] sm:$0xff]  ;;  %v1990_v60 = vld [vmem:[#allocation10 + $0x38] sm:$0xff] }
 0x772   : > { %v2518_v26 = vpop.f32.mrf.mxu0 }
 0x773   : > { %2039 = vrot.lane.b32.xlu0 %v1975_v21, %s3111_s25  ;;  %1999 = vrot.lane.b32.xlu1 %v1975_v21, %s3112_s29  ;;  %v3843_v54 = vadd.f32 %v2320_v27, %v1961_v6  ;;  %v1966_v15 = vadd.f32 %v2518_v26, %v3803_v1  ;;  %v1994_v47 = vmul.f32 %v1986_v55, %v1978_v45 }
 0x774   : > { %v1945_v17 = vpop.f32.mrf.mxu0 }
 0x775   : > { %v3849_v30 = vadd.f32 %v2320_v27, %v1966_v15  ;;  %v1964_v37 = vadd.f32 %v1945_v17, %v3805_v58  ;;  %v1992_v50 = vmul.f32 %v1984_v52, %v3843_v54  ;;  %v2020_v17 = vld [vmem:[#allocation11 + $0x28] sm:$0xff] }
 0x776   : > { %v2519_v51 = vpop.f32.mrf.mxu0 }
 0x777   : > { %2005 = vrot.lane.b32.xlu1 %v1978_v45, %s3112_s29  ;;  %2001 = vrot.lane.b32.xlu0 %v3843_v54, %s3112_s29  ;;  %v3855_v28 = vadd.f32 %v2320_v27, %v1964_v37  ;;  %v1967_v1 = vadd.f32 %v2519_v51, %v3807_v4  ;;  %v1985_v4 = vld [vmem:[#allocation10 + $0x10] sm:$0xff]  ;;  %v1997_v51 = vmul.f32 %v1989_v23, %v3849_v30 }
 0x778   : > { %v1948_v40 = vpop.f32.mrf.mxu0  ;;  %v1993_v57 = vmul.f32 %v1985_v4, %v1977_v41  ;;  %v2061_v37 = vld [vmem:[#allocation13 + $0x30] sm:$0xff] }
 0x779   : > { %v3862_v24 = vadd.f32 %v2320_v27, %v1967_v1  ;;  %v1965_v58 = vadd.f32 %v1948_v40, %v3809_v8  ;;  %v2017_v8 = vld [vmem:[#allocation11 + $0x10] sm:$0xff]  ;;  %v1995_v21 = vmul.f32 %v1987_v7, %v3855_v28  ;;  %v1988_v40 = vld [vmem:[#allocation10 + $0x28] sm:$0xff] }
 0x77b   : > { %2045 = vrot.lane.b32.xlu1 %v1978_v45, %s3111_s25  ;;  %2011 = vrot.lane.b32.xlu0 %v3849_v30, %s3112_s29  ;;  %v3869_v22 = vadd.f32 %v2320_v27, %v1965_v58 }
 0x77f   : > { %2041 = vrot.lane.b32.xlu1 %v3843_v54, %s3111_s25  ;;  %2007 = vrot.lane.b32.xlu0 %v3855_v28, %s3112_s29 }
 0x783   : > { %2047 = vrot.lane.b32.xlu0 %v3855_v28, %s3111_s25  ;;  %2013 = vrot.lane.b32.xlu1 %v3862_v24, %s3112_s29 }
 0x787   : > { %2051 = vrot.lane.b32.xlu0 %v3849_v30, %s3111_s25  ;;  %2009 = vrot.lane.b32.xlu1 %v3869_v22, %s3112_s29 }
 0x78b   : > { %2049 = vrot.lane.b32.xlu1 %v3869_v22, %s3111_s25 }
 0x78f   : > { %2053 = vrot.lane.b32.xlu1 %v3862_v24, %s3111_s25 }
 0x7e1   : > { %v2004_v29 = vpop.permute.xlu1 %2003  ;;  %v2044_v32 = vpop.permute.xlu0 %2043 }
 0x7e2   : > { %v2025_v2 = vmul.f32 %v2017_v8, %v2004_v29  ;;  %v2065_v18 = vmul.f32 %v2057_v63, %v2044_v32  ;;  %v2022_v63 = vld [vmem:[#allocation11 + $0x38] sm:$0xff]  ;;  %v2060_v32 = vld [vmem:[#allocation13 + $0x28] sm:$0xff] }
 0x7e4   : > { %v2033_v0 = vadd.f32 %v2025_v2, %v1993_v57  ;;  %v1996_v57 = vmul.f32 %v1988_v40, %v3869_v22 }
 0x7e5   : > { %v2000_v44 = vpop.permute.xlu1 %1999  ;;  %v2040_v48 = vpop.permute.xlu0 %2039 }
 0x7e6   : > { %v2073_v20 = vadd.f32 %v2065_v18, %v2033_v0  ;;  %v2023_v33 = vmul.f32 %v2015_v12, %v2000_v44  ;;  %v2063_v14 = vmul.f32 %v2055_v34, %v2040_v48  ;;  %v2062_v44 = vld [vmem:[#allocation13 + $0x38] sm:$0xff]  ;;  %v1998_v34 = vmul.f32 %v1990_v60, %v3862_v24 }
 0x7e8   : > { %2081 = vst [vmem:[%s3880_s13 + $0x10] sm:$0xff] %v2073_v20  ;;  %v2031_v56 = vadd.f32 %v2023_v33, %v1991_v61 }
 0x7e9   : > { %v2006_v31 = vpop.permute.xlu1 %2005  ;;  %v2002_v10 = vpop.permute.xlu0 %2001 }
 0x7ea   : > { %v2071_v35 = vadd.f32 %v2063_v14, %v2031_v56  ;;  %v2026_v13 = vmul.f32 %v2018_v11, %v2006_v31  ;;  %v2024_v25 = vmul.f32 %v2016_v36, %v2002_v10 }
 0x7ec   : > { %2079 = vst [vmem:[%s3880_s13] sm:$0xff] %v2071_v35  ;;  %v2034_v16 = vadd.f32 %v2026_v13, %v1994_v47  ;;  %v2032_v38 = vadd.f32 %v2024_v25, %v1992_v50 }
 0x7ed   : > { %v2046_v5 = vpop.permute.xlu1 %2045  ;;  %v2012_v46 = vpop.permute.xlu0 %2011 }
 0x7ee   : > { %v2066_v39 = vmul.f32 %v2058_v43, %v2046_v5  ;;  %v2029_v45 = vmul.f32 %v2021_v53, %v2012_v46 }
 0x7f0   : > { %v2074_v19 = vadd.f32 %v2066_v39, %v2034_v16  ;;  %v2037_v8 = vadd.f32 %v2029_v45, %v1997_v51 }
 0x7f1   : > { %v2042_v3 = vpop.permute.xlu1 %2041  ;;  %v2008_v27 = vpop.permute.xlu0 %2007 }
 0x7f2   : > { %2082 = vst [vmem:[%s3880_s13 + $0x18] sm:$0xff] %v2074_v19  ;;  %v2064_v9 = vmul.f32 %v2056_v62, %v2042_v3  ;;  %v2027_v41 = vmul.f32 %v2019_v49, %v2008_v27 }
 0x7f4   : > { %v2072_v42 = vadd.f32 %v2064_v9, %v2032_v38  ;;  %v2035_v54 = vadd.f32 %v2027_v41, %v1995_v21 }
 0x7f5   : > { %v2014_v6 = vpop.permute.xlu1 %2013  ;;  %v2048_v26 = vpop.permute.xlu0 %2047 }
 0x7f6   : > { %2080 = vst [vmem:[%s3880_s13 + $0x8] sm:$0xff] %v2072_v42  ;;  %v2067_v15 = vmul.f32 %v2059_v59, %v2048_v26  ;;  %v2030_v30 = vmul.f32 %v2022_v63, %v2014_v6 }
 0x7f8   : > { %v2075_v1 = vadd.f32 %v2067_v15, %v2035_v54  ;;  %v2038_v22 = vadd.f32 %v2030_v30, %v1998_v34 }
 0x7f9   : > { %v2010_v58 = vpop.permute.xlu1 %2009  ;;  %v2052_v4 = vpop.permute.xlu0 %2051 }
 0x7fa   : > { %2083 = vst [vmem:[%s3880_s13 + $0x20] sm:$0xff] %v2075_v1  ;;  %v2028_v28 = vmul.f32 %v2020_v17, %v2010_v58  ;;  %v2069_v29 = vmul.f32 %v2061_v37, %v2052_v4 }
 0x7fc   : > { %v2077_v2 = vadd.f32 %v2069_v29, %v2037_v8  ;;  %v2036_v0 = vadd.f32 %v2028_v28, %v1996_v57 }
 0x7fd   : > { %v2050_v12 = vpop.permute.xlu1 %2049 }
 0x7fe   : > { %2085 = vst [vmem:[%s3880_s13 + $0x30] sm:$0xff] %v2077_v2  ;;  %v2068_v18 = vmul.f32 %v2060_v32, %v2050_v12 }
 0x800   : > { %v2076_v48 = vadd.f32 %v2068_v18, %v2036_v0 }
 0x801   : > { %v2054_v20 = vpop.permute.xlu1 %2053 }
 0x802   : > { %2084 = vst [vmem:[%s3880_s13 + $0x28] sm:$0xff] %v2076_v48  ;;  %v2070_v61 = vmul.f32 %v2062_v44, %v2054_v20 }
 0x804   : > { %v2078_v33 = vadd.f32 %v2070_v61, %v2038_v22 }
 0x806   : > { %2086 = vst [vmem:[%s3880_s13 + $0x38] sm:$0xff] %v2078_v33 }
 0x807   : > { %3031 = shalt.err (!%p3028_p3)
}
 0x808   : > { %s3032_s23 = scalar_lea.hbm %s3901_s16, 1024  ;;  %s3036_s3 = scalar_lea.hbm %s3954_s9, 2048 }
 0x809   : > { %p3033_p6 = scmp.ne.s32.totalorder %s3901_s16, %s3032_s23  ;;  %p3037_p11 = scmp.lt.s32.totalorder %s3901_s16, %s3954_s9 }
 0x80a   : > { %p3038_p7 = scmp.lt.s32.totalorder %s3036_s3, %s3032_s23 }
 0x80b   : > { %p3034_p10 = pnand %p3033_p6, %p3985_p5 }
 0x80c   : > { %p3039_p0 = por %p3038_p7, %p3037_p11 }
 0x80d   : > { %p3035_p12 = pneg %p3034_p10 }
 0x80f   : > { %p3040_p2 = pnand %p3039_p0, %p3035_p12 }
 0x811   : > { %3043 = shalt.err (!%p3040_p2)
}
 0x812   : > { %s3114_s19 = smov 128   ;;  %s3115_s1 = smov 8  }
 0x813   : > { %2562 = dma.vmem_to_hbm [thread:$0]  (%p3985_p5), %s3895_s5, 1024, %s3901_s16, %s2088_s27, %s3114_s19, %s3114_s19, %s3115_s1  }
 0x814 PF: > { %s2116_s28 = sand.u32 1, %s3082_s30   ;;  %p3986_p8 = scmp.ne.s32.totalorder %s3973_s26, 0 }
 0x815   : > { %p3987_p9 = scmp.ge.s32.totalorder %s3094_s12, 2  ;;  %s2117_s15 = scalar_lea.sflag [#allocation4], %s2116_s28 }
 0x817   : > { %p2588_p4 = pnand %p3987_p9, %p3986_p8 }
 0x819   : > { %p2589_p13 = pneg %p2588_p4 }
 0x81b   : > { %3077 = dma.done.wait (%p2589_p13), %s2117_s15, 1024  }
 0x81c   : > { %3079 = vsyncadd (%p2589_p13), %s2117_s15, 4294966272  ;;  %p25_p1 = scmp.ge.s32.totalorder %s3287_s22, 4   ;;  %s3988_s30 = smov %s3086_s10 }
 0x81d   : > { %s3989_s10 = smov %s3090_s11  ;;  %s3990_s11 = smov %s3298_s18 }
 0x81e   : > { %s3991_s12 = smov %s3287_s22  ;;  %27 = sbr.rel (!%p25_p1) target bundleno = 12 (0xc), region = 125 }
 0x823   :  { %2122 = vsyncpa [#allocation3], 1 }
 0x824   :  { %2124 = vsyncpa [#allocation3 + $0x1], 1 }
 0x825   :  { %2125 = vsyncpa [#allocation6], 1 }
 0x826   :  { %2126 = vsyncpa [#allocation9], 1 }
 0x827   :  { %2127 = vsyncpa [#allocation12], 1 }
 0x828   :  { %2128 = vsyncpa [#allocation4], 1 }
 0x829   :  { %2130 = vsyncpa [#allocation4 + $0x1], 1 }

</bundles_post_ra>
